<compile_context>
chip_gen: v5e
topology: v5e:2x2
jax: 0.10.0
libtpu: 0.0.40
codegen_flags: <defaults>
</compile_context>

<pallas_src>
import functools
import random

import jax
import jax.numpy as jnp
from jax.experimental import pallas as pl
from jax.experimental.pallas import tpu as pltpu


# ----------------------------------------------------------------------------
# Weight packing: row-stack many small matrices into one slab so the kernel
# gets few operands (few DMAs).  Every section starts at a sublane-aligned
# (multiple-of-8) row and is zero-padded to `lanes` on the lane axis, so the
# in-kernel slices are cheap static loads.
# ----------------------------------------------------------------------------
def _pack_rows(sections, lanes):
    offs = {}
    parts = []
    row = 0
    for name, a in sections:
        a = jnp.asarray(a, jnp.float32)
        r, c = a.shape
        offs[name] = (row, r, c)
        pad_r = (-r) % 8
        parts.append(jnp.pad(a, ((0, pad_r), (0, lanes - c))))
        row += r + pad_r
    return jnp.concatenate(parts, axis=0), offs


# ----------------------------------------------------------------------------
# Fused hierarchical-decoder kernel (grid-less; everything in one invocation)
# ----------------------------------------------------------------------------
def _hier_decoder_kernel(latent_ref, cond_ref, dec_ref, small_ref, *rest,
                         tf_flags, has_target, dims,
                         cond_offs, dec_offs, small_offs):
    S, T, ci, Hc, Hd = dims
    f32 = jnp.float32
    if has_target:
        target_ref, out_ref = rest
    else:
        (out_ref,) = rest
        target_ref = None

    B = latent_ref.shape[0]
    seq = S * T

    def sl(ref, offs, name):
        r0, r, c = offs[name]
        return ref[r0:r0 + r, 0:c]

    # ---- one-time hoisted loads (static slab slices) -------------------------
    latent = latent_ref[...]
    w_cih = sl(cond_ref, cond_offs, "w_cih")
    w_chh = sl(cond_ref, cond_offs, "w_chh")
    b_c = sl(cond_ref, cond_offs, "b_c")

    w_dtok = sl(dec_ref, dec_offs, "w_dtok") if has_target else None
    w_demb = sl(dec_ref, dec_offs, "w_demb")
    w_dhh = sl(dec_ref, dec_offs, "w_dhh")
    b_d = sl(dec_ref, dec_offs, "b_d")
    w_fb = sl(dec_ref, dec_offs, "w_fb")      # = w_do @ w_dtok (offline)
    b_fb = sl(dec_ref, dec_offs, "b_fb")      # = b_do @ w_dtok (offline)

    w_ic = sl(small_ref, small_offs, "w_ic")
    b_ic = sl(small_ref, small_offs, "b_ic")
    w_co = sl(small_ref, small_offs, "w_co")
    b_co = sl(small_ref, small_offs, "b_co")
    w_id = sl(small_ref, small_offs, "w_id")
    b_id = sl(small_ref, small_offs, "b_id")
    w_do = sl(small_ref, small_offs, "w_do")
    b_do = sl(small_ref, small_offs, "b_do")

    def lstm_cell(gates, c_prev, H):
        # Fused gate layout (i | f | o | g): one sigmoid push (i,f,o share it)
        # and one tanh push per cell instead of four EUP pushes.
        sfo = jax.nn.sigmoid(gates)
        g = jnp.tanh(gates[:, 3 * H:4 * H])
        i = sfo[:, 0:H]
        f = sfo[:, H:2 * H]
        o = sfo[:, 2 * H:3 * H]
        c = f * c_prev + i * g
        return o * jnp.tanh(c), c

    # ---- conductor ------------------------------------------------------------
    # h0 = tanh(fc_init_cond(latent)); PyTorch passes (h0,)*2 => c0 = h0.
    h_c = jnp.tanh(jnp.dot(latent, w_ic, preferred_element_type=f32) + b_ic)
    c_c = h_c

    # Input-gate contributions of all S conductor steps in ONE dot (they depend
    # only on latent); bias folded here.  Recurrence is then 1 MXU dot / step.
    x_stack = jnp.concatenate(
        [latent[:, s * ci:(s + 1) * ci] for s in range(S)], axis=0)   # (S*B, ci)
    x_gates = jnp.dot(x_stack, w_cih, preferred_element_type=f32) + b_c

    hc_list = []
    for s in range(S):
        gates = (jnp.dot(h_c, w_chh, preferred_element_type=f32)
                 + x_gates[s * B:(s + 1) * B, :])
        h_c, c_c = lstm_cell(gates, c_c, Hc)
        hc_list.append(h_c)
    hc_stack = jnp.concatenate(hc_list, axis=0)                       # (S*B, Hc)

    # Batched conductor epilogue: conductor_output, fc_init_dec and the
    # (constant-within-subsequence) embedding-gate term, ONE dot each for all
    # S subsequences, biases folded in, all off the recurrence.
    emb_stack = jnp.dot(hc_stack, w_co, preferred_element_type=f32) + b_co
    h0_stack = jnp.tanh(jnp.dot(emb_stack, w_id, preferred_element_type=f32)
                        + b_id)                                       # (S*B, Hd)
    eg_stack = jnp.dot(emb_stack, w_demb, preferred_element_type=f32) + b_d

    # ---- decoder --------------------------------------------------------------
    h_prev_stack = None     # (T*B, Hd): hidden states of the previous subseq
    tf_prev = False
    h_all = []
    for sub in range(S):
        emb_gate = eg_stack[sub * B:(sub + 1) * B, :]                 # (B, 4Hd)

        # Token-gate contribution of ALL T steps of this subsequence in one dot
        # (the feedback tokens are fully known at subsequence start).
        if sub == 0:
            # First subsequence feedback token is zeros -> contribution is 0.
            pre_gates = jnp.concatenate([emb_gate] * T, axis=0)       # (T*B,4Hd)
        elif tf_prev:
            tgt_stack = jnp.concatenate(
                [target_ref[:, (sub - 1) * T + t, :] for t in range(T)],
                axis=0)                                               # (T*B, I)
            pre_gates = (jnp.dot(tgt_stack, w_dtok,
                                 preferred_element_type=f32)
                         + jnp.concatenate([emb_gate] * T, axis=0))
        else:
            # Feedback tokens are h_prev @ w_do + b_do; their gate contribution
            # is folded through w_fb / b_fb so the decoder_output projection
            # never sits between subsequences.
            pre_gates = (jnp.dot(h_prev_stack, w_fb,
                                 preferred_element_type=f32)
                         + jnp.concatenate([emb_gate + b_fb] * T, axis=0))

        h_d = h0_stack[sub * B:(sub + 1) * B, :]
        c_d = h_d                                       # PyTorch: c0 = h0
        hs = []
        for t in range(T):
            gates = (jnp.dot(h_d, w_dhh, preferred_element_type=f32)
                     + pre_gates[t * B:(t + 1) * B, :])
            h_d, c_d = lstm_cell(gates, c_d, Hd)
            hs.append(h_d)
        h_prev_stack = jnp.concatenate(hs, axis=0)                    # (T*B, Hd)
        h_all.append(h_prev_stack)
        tf_prev = tf_flags[sub]

    # ---- deferred decoder_output projection + single lane-dense store --------
    h_full = jnp.concatenate(h_all, axis=0)                           # (seq*B,Hd)
    tok_full = jnp.dot(h_full, w_do, preferred_element_type=f32) + b_do
    out_ref[...] = jnp.concatenate(
        [tok_full[k * B:(k + 1) * B, :] for k in range(seq)], axis=-1)


# ----------------------------------------------------------------------------
# Module
# ----------------------------------------------------------------------------
class DecoderRNNHierarchical:
    def __init__(self, input_size, latent_size, cond_hidden_size, cond_outdim,
                 dec_hidden_size, num_layers, num_subsequences, seq_length,
                 teacher_forcing_ratio=0.0, *, key):
        if num_layers != 1:
            # TODO(synk): fused kernel implements num_layers == 1 only.
            raise NotImplementedError("fused kernel supports num_layers == 1")
        self.input_size = input_size
        self.latent_size = latent_size
        self.cond_hidden_size = cond_hidden_size
        self.cond_outdim = cond_outdim
        self.dec_hidden_size = dec_hidden_size
        self.num_layers = num_layers
        self.num_subsequences = num_subsequences
        self.seq_length = seq_length
        self.subseq_size = seq_length // num_subsequences
        self.teacher_forcing_ratio = teacher_forcing_ratio

        def init(k, shape, scale=0.1):
            return scale * jax.random.normal(k, shape, dtype=jnp.float32)

        keys = iter(jax.random.split(key, 16))
        ci = latent_size // num_subsequences
        Hc, Hd, Co, I, L = (cond_hidden_size, dec_hidden_size, cond_outdim,
                            input_size, latent_size)

        # Fused LSTM gate layout is (i | f | o | g), single bias = b_ih + b_hh.
        # NOTE: when importing PyTorch nn.LSTM weights, permute the PyTorch
        # (i,f,g,o) gate blocks to (i,f,o,g), transpose to (in, 4H), and
        # pre-sum b_ih + b_hh.  Random init here.
        w_ic = init(next(keys), (L, Hc));    b_ic = init(next(keys), (1, Hc))
        w_cih = init(next(keys), (ci, 4 * Hc))
        w_chh = init(next(keys), (Hc, 4 * Hc))
        b_c = init(next(keys), (1, 4 * Hc))
        w_co = init(next(keys), (Hc, Co));   b_co = init(next(keys), (1, Co))
        w_id = init(next(keys), (Co, Hd));   b_id = init(next(keys), (1, Hd))
        w_dtok = init(next(keys), (I, 4 * Hd))
        w_demb = init(next(keys), (Co, 4 * Hd))
        w_dhh = init(next(keys), (Hd, 4 * Hd))
        b_d = init(next(keys), (1, 4 * Hd))
        w_do = init(next(keys), (Hd, I));    b_do = init(next(keys), (1, I))

        # Offline fused feedback weights: token-gate of produced tokens.
        w_fb = jnp.dot(w_do, w_dtok)          # (Hd, 4Hd)
        b_fb = jnp.dot(b_do, w_dtok)          # (1, 4Hd)

        # Packed operand slabs (4 operand DMAs instead of 17).
        self.cond_slab, self.cond_offs = _pack_rows(
            [("w_cih", w_cih), ("w_chh", w_chh), ("b_c", b_c)], 4 * Hc)
        self.dec_slab, self.dec_offs = _pack_rows(
            [("w_dtok", w_dtok), ("w_demb", w_demb), ("w_dhh", w_dhh),
             ("b_d", b_d), ("w_fb", w_fb), ("b_fb", b_fb)], 4 * Hd)
        sm_lanes = max(Hc, Hd, Co, I)
        self.small_slab, self.small_offs = _pack_rows(
            [("w_ic", w_ic), ("b_ic", b_ic), ("w_co", w_co), ("b_co", b_co),
             ("w_id", w_id), ("b_id", b_id), ("w_do", w_do), ("b_do", b_do)],
            sm_lanes)

    def _cost_estimate(self, B):
        S, T = self.num_subsequences, self.subseq_size
        ci = self.latent_size // S
        Hc, Co = self.cond_hidden_size, self.cond_outdim
        Hd, I, L = self.dec_hidden_size, self.input_size, self.latent_size
        flops = (2 * B * L * Hc                              # fc_init_cond
                 + 2 * S * B * ci * 4 * Hc                   # cond input gates
                 + S * 2 * B * Hc * 4 * Hc                   # cond recurrence
                 + 2 * S * B * (Hc * Co + Co * Hd + Co * 4 * Hd)
                 + S * T * 2 * B * Hd * 4 * Hd               # dec recurrence
                 + (S - 1) * T * 2 * B * Hd * 4 * Hd         # feedback gates
                 + S * T * 2 * B * Hd * I)                   # output projection
        trans = (B * Hc + S * B * (4 * Hc + 2 * Hc + Hd)
                 + S * T * B * (4 * Hd + 2 * Hd))
        bytes_accessed = 4 * (B * L + B * S * T * I
                              + int(self.cond_slab.size)
                              + int(self.dec_slab.size)
                              + int(self.small_slab.size))
        return pl.CostEstimate(flops=int(flops), transcendentals=int(trans),
                               bytes_accessed=int(bytes_accessed))

    def __call__(self, latent, target, batch_size, teacher_forcing):
        B = batch_size
        S = self.num_subsequences
        T = self.subseq_size
        ci = self.latent_size // S
        # Teacher-forcing gate mirrors the PyTorch python-random decision.
        # NOTE: decided at trace time (frozen under jit; recompile per pattern);
        # fine for the eval path used here (teacher_forcing=False).
        tf_flags = tuple(
            bool(teacher_forcing
                 and random.random() <= self.teacher_forcing_ratio)
            for _ in range(S))
        # Only flags [0 .. S-2] affect anything (they gate the NEXT subseq's
        # feedback); drop the dead `target` DMA in the common eval path.
        has_target = any(tf_flags[:S - 1]) if S > 1 else False

        inputs = [latent, self.cond_slab, self.dec_slab, self.small_slab]
        if has_target:
            inputs.append(target)

        out_flat = pl.pallas_call(
            functools.partial(
                _hier_decoder_kernel,
                tf_flags=tf_flags, has_target=has_target,
                dims=(S, T, ci, self.cond_hidden_size, self.dec_hidden_size),
                cond_offs=self.cond_offs, dec_offs=self.dec_offs,
                small_offs=self.small_offs),
            out_shape=jax.ShapeDtypeStruct(
                (B, self.seq_length * self.input_size), jnp.float32),
            in_specs=[pl.BlockSpec(memory_space=pltpu.MemorySpace.VMEM)
                      for _ in inputs],
            out_specs=pl.BlockSpec(memory_space=pltpu.MemorySpace.VMEM),
            cost_estimate=self._cost_estimate(B),
        )(*inputs)

        # Lane-dense (B, seq*input) slab -> (B, seq, input); contiguous reshape.
        return out_flat.reshape(B, self.seq_length, self.input_size)


# ----------------------------------------------------------------------------
if __name__ == "__main__":
    batch_size = 2
    input_size = 8
    latent_size = 16
    cond_hidden_size = 32
    cond_outdim = 16
    dec_hidden_size = 32
    num_layers = 1
    num_subsequences = 4
    seq_length = 16

    root = jax.random.PRNGKey(0)
    k_model, k_latent, k_target = jax.random.split(root, 3)

    model = DecoderRNNHierarchical(
        input_size=input_size,
        latent_size=latent_size,
        cond_hidden_size=cond_hidden_size,
        cond_outdim=cond_outdim,
        dec_hidden_size=dec_hidden_size,
        num_layers=num_layers,
        num_subsequences=num_subsequences,
        seq_length=seq_length,
        teacher_forcing_ratio=0.0,
        key=k_model,
    )

    latent = jax.random.normal(k_latent, (batch_size, latent_size), jnp.float32)
    target = jax.random.normal(k_target, (batch_size, seq_length, input_size),
                               jnp.float32)

    out = model(latent, target, batch_size, teacher_forcing=False)
    out = jax.block_until_ready(out)
    assert out.shape == (batch_size, seq_length, input_size), out.shape
    assert bool(jnp.all(jnp.isfinite(out)))
    print("KERNEL_OK")
</pallas_src>

<mosaic_0001>
module attributes {stable_mosaic.version = 11 : i64} {
  func.func @_hier_decoder_kernel(%arg0: memref<2x16xf32, #tpu.memory_space<vmem>>, %arg1: memref<48x128xf32, #tpu.memory_space<vmem>>, %arg2: memref<104x128xf32, #tpu.memory_space<vmem>>, %arg3: memref<128x32xf32, #tpu.memory_space<vmem>>, %arg4: memref<2x128xf32, #tpu.memory_space<vmem>>) attributes {dimension_semantics = [], scalar_prefetch = 0 : i64, scratch_operands = 0 : i64, tpu.core_type = #tpu.core_type<tc>} {
    %c0 = arith.constant 0 : index
    %c0_0 = arith.constant 0 : index
    %0 = vector.load %arg0[%c0, %c0_0] : memref<2x16xf32, #tpu.memory_space<vmem>>, vector<2x16xf32>
    %c0_1 = arith.constant 0 : index
    %c0_2 = arith.constant 0 : index
    %1 = vector.load %arg1[%c0_1, %c0_2] : memref<48x128xf32, #tpu.memory_space<vmem>>, vector<4x128xf32>
    %c8 = arith.constant 8 : index
    %c0_3 = arith.constant 0 : index
    %2 = vector.load %arg1[%c8, %c0_3] : memref<48x128xf32, #tpu.memory_space<vmem>>, vector<32x128xf32>
    %c40 = arith.constant 40 : index
    %c0_4 = arith.constant 0 : index
    %3 = vector.load %arg1[%c40, %c0_4] : memref<48x128xf32, #tpu.memory_space<vmem>>, vector<1x128xf32>
    %c8_5 = arith.constant 8 : index
    %c0_6 = arith.constant 0 : index
    %4 = vector.load %arg2[%c8_5, %c0_6] : memref<104x128xf32, #tpu.memory_space<vmem>>, vector<16x128xf32>
    %c24 = arith.constant 24 : index
    %c0_7 = arith.constant 0 : index
    %5 = vector.load %arg2[%c24, %c0_7] : memref<104x128xf32, #tpu.memory_space<vmem>>, vector<32x128xf32>
    %c56 = arith.constant 56 : index
    %c0_8 = arith.constant 0 : index
    %6 = vector.load %arg2[%c56, %c0_8] : memref<104x128xf32, #tpu.memory_space<vmem>>, vector<1x128xf32>
    %c64 = arith.constant 64 : index
    %c0_9 = arith.constant 0 : index
    %7 = vector.load %arg2[%c64, %c0_9] : memref<104x128xf32, #tpu.memory_space<vmem>>, vector<32x128xf32>
    %c96 = arith.constant 96 : index
    %c0_10 = arith.constant 0 : index
    %8 = vector.load %arg2[%c96, %c0_10] : memref<104x128xf32, #tpu.memory_space<vmem>>, vector<1x128xf32>
    %c0_11 = arith.constant 0 : index
    %c0_12 = arith.constant 0 : index
    %9 = vector.load %arg3[%c0_11, %c0_12] : memref<128x32xf32, #tpu.memory_space<vmem>>, vector<16x32xf32>
    %c16 = arith.constant 16 : index
    %c0_13 = arith.constant 0 : index
    %10 = vector.load %arg3[%c16, %c0_13] : memref<128x32xf32, #tpu.memory_space<vmem>>, vector<1x32xf32>
    %c24_14 = arith.constant 24 : index
    %c0_15 = arith.constant 0 : index
    %11 = vector.load %arg3[%c24_14, %c0_15] : memref<128x32xf32, #tpu.memory_space<vmem>>, vector<32x16xf32>
    %c56_16 = arith.constant 56 : index
    %c0_17 = arith.constant 0 : index
    %12 = vector.load %arg3[%c56_16, %c0_17] : memref<128x32xf32, #tpu.memory_space<vmem>>, vector<1x16xf32>
    %c64_18 = arith.constant 64 : index
    %c0_19 = arith.constant 0 : index
    %13 = vector.load %arg3[%c64_18, %c0_19] : memref<128x32xf32, #tpu.memory_space<vmem>>, vector<16x32xf32>
    %c80 = arith.constant 80 : index
    %c0_20 = arith.constant 0 : index
    %14 = vector.load %arg3[%c80, %c0_20] : memref<128x32xf32, #tpu.memory_space<vmem>>, vector<1x32xf32>
    %c88 = arith.constant 88 : index
    %c0_21 = arith.constant 0 : index
    %15 = vector.load %arg3[%c88, %c0_21] : memref<128x32xf32, #tpu.memory_space<vmem>>, vector<32x8xf32>
    %c120 = arith.constant 120 : index
    %c0_22 = arith.constant 0 : index
    %16 = vector.load %arg3[%c120, %c0_22] : memref<128x32xf32, #tpu.memory_space<vmem>>, vector<1x8xf32>
    %cst = arith.constant dense<0.000000e+00> : vector<2x32xf32>
    %17 = tpu.matmul %0, %9, %cst {dimension_numbers = #tpu.dot_dimension_numbers<[1], [0], [0], [1], [0, 0, 1, 1], [], []>} : vector<2x16xf32>, vector<16x32xf32>, vector<2x32xf32> -> vector<2x32xf32>
    %18 = vector.broadcast %10 : vector<1x32xf32> to vector<2x32xf32>
    %19 = arith.addf %17, %18 : vector<2x32xf32>
    %20 = math.tanh %19 : vector<2x32xf32>
    %21 = vector.extract_strided_slice %0 {offsets = [0, 0], sizes = [2, 4], strides = [1, 1]} : vector<2x16xf32> to vector<2x4xf32>
    %22 = vector.extract_strided_slice %0 {offsets = [0, 4], sizes = [2, 4], strides = [1, 1]} : vector<2x16xf32> to vector<2x4xf32>
    %23 = vector.extract_strided_slice %0 {offsets = [0, 8], sizes = [2, 4], strides = [1, 1]} : vector<2x16xf32> to vector<2x4xf32>
    %24 = vector.extract_strided_slice %0 {offsets = [0, 12], sizes = [2, 4], strides = [1, 1]} : vector<2x16xf32> to vector<2x4xf32>
    %25 = tpu.concatenate %21, %22, %23, %24 in 0 : vector<2x4xf32>, vector<2x4xf32>, vector<2x4xf32>, vector<2x4xf32> -> vector<8x4xf32>
    %cst_23 = arith.constant dense<0.000000e+00> : vector<8x128xf32>
    %26 = tpu.matmul %25, %1, %cst_23 {dimension_numbers = #tpu.dot_dimension_numbers<[1], [0], [0], [1], [0, 0, 1, 1], [], []>} : vector<8x4xf32>, vector<4x128xf32>, vector<8x128xf32> -> vector<8x128xf32>
    %27 = vector.broadcast %3 : vector<1x128xf32> to vector<8x128xf32>
    %28 = arith.addf %26, %27 : vector<8x128xf32>
    %cst_24 = arith.constant dense<0.000000e+00> : vector<2x128xf32>
    %29 = tpu.matmul %20, %2, %cst_24 {dimension_numbers = #tpu.dot_dimension_numbers<[1], [0], [0], [1], [0, 0, 1, 1], [], []>} : vector<2x32xf32>, vector<32x128xf32>, vector<2x128xf32> -> vector<2x128xf32>
    %30 = vector.extract_strided_slice %28 {offsets = [0, 0], sizes = [2, 128], strides = [1, 1]} : vector<8x128xf32> to vector<2x128xf32>
    %31 = arith.addf %29, %30 : vector<2x128xf32>
    %32 = arith.negf %31 : vector<2x128xf32>
    %33 = math.exp %32 : vector<2x128xf32>
    %cst_25 = arith.constant 1.000000e+00 : f32
    %34 = vector.broadcast %cst_25 : f32 to vector<2x128xf32>
    %35 = arith.addf %34, %33 : vector<2x128xf32>
    %36 = arith.divf %34, %35 : vector<2x128xf32>
    %37 = vector.extract_strided_slice %31 {offsets = [0, 96], sizes = [2, 32], strides = [1, 1]} : vector<2x128xf32> to vector<2x32xf32>
    %38 = math.tanh %37 : vector<2x32xf32>
    %39 = vector.extract_strided_slice %36 {offsets = [0, 0], sizes = [2, 32], strides = [1, 1]} : vector<2x128xf32> to vector<2x32xf32>
    %40 = vector.extract_strided_slice %36 {offsets = [0, 32], sizes = [2, 32], strides = [1, 1]} : vector<2x128xf32> to vector<2x32xf32>
    %41 = vector.extract_strided_slice %36 {offsets = [0, 64], sizes = [2, 32], strides = [1, 1]} : vector<2x128xf32> to vector<2x32xf32>
    %42 = arith.mulf %40, %20 : vector<2x32xf32>
    %43 = arith.mulf %39, %38 : vector<2x32xf32>
    %44 = arith.addf %42, %43 : vector<2x32xf32>
    %45 = math.tanh %44 : vector<2x32xf32>
    %46 = arith.mulf %41, %45 : vector<2x32xf32>
    %cst_26 = arith.constant dense<0.000000e+00> : vector<2x128xf32>
    %47 = tpu.matmul %46, %2, %cst_26 {dimension_numbers = #tpu.dot_dimension_numbers<[1], [0], [0], [1], [0, 0, 1, 1], [], []>} : vector<2x32xf32>, vector<32x128xf32>, vector<2x128xf32> -> vector<2x128xf32>
    %48 = vector.extract_strided_slice %28 {offsets = [2, 0], sizes = [2, 128], strides = [1, 1]} : vector<8x128xf32> to vector<2x128xf32>
    %49 = arith.addf %47, %48 : vector<2x128xf32>
    %50 = arith.negf %49 : vector<2x128xf32>
    %51 = math.exp %50 : vector<2x128xf32>
    %cst_27 = arith.constant 1.000000e+00 : f32
    %52 = vector.broadcast %cst_27 : f32 to vector<2x128xf32>
    %53 = arith.addf %52, %51 : vector<2x128xf32>
    %54 = arith.divf %52, %53 : vector<2x128xf32>
    %55 = vector.extract_strided_slice %49 {offsets = [0, 96], sizes = [2, 32], strides = [1, 1]} : vector<2x128xf32> to vector<2x32xf32>
    %56 = math.tanh %55 : vector<2x32xf32>
    %57 = vector.extract_strided_slice %54 {offsets = [0, 0], sizes = [2, 32], strides = [1, 1]} : vector<2x128xf32> to vector<2x32xf32>
    %58 = vector.extract_strided_slice %54 {offsets = [0, 32], sizes = [2, 32], strides = [1, 1]} : vector<2x128xf32> to vector<2x32xf32>
    %59 = vector.extract_strided_slice %54 {offsets = [0, 64], sizes = [2, 32], strides = [1, 1]} : vector<2x128xf32> to vector<2x32xf32>
    %60 = arith.mulf %58, %44 : vector<2x32xf32>
    %61 = arith.mulf %57, %56 : vector<2x32xf32>
    %62 = arith.addf %60, %61 : vector<2x32xf32>
    %63 = math.tanh %62 : vector<2x32xf32>
    %64 = arith.mulf %59, %63 : vector<2x32xf32>
    %cst_28 = arith.constant dense<0.000000e+00> : vector<2x128xf32>
    %65 = tpu.matmul %64, %2, %cst_28 {dimension_numbers = #tpu.dot_dimension_numbers<[1], [0], [0], [1], [0, 0, 1, 1], [], []>} : vector<2x32xf32>, vector<32x128xf32>, vector<2x128xf32> -> vector<2x128xf32>
    %66 = vector.extract_strided_slice %28 {offsets = [4, 0], sizes = [2, 128], strides = [1, 1]} : vector<8x128xf32> to vector<2x128xf32>
    %67 = arith.addf %65, %66 : vector<2x128xf32>
    %68 = arith.negf %67 : vector<2x128xf32>
    %69 = math.exp %68 : vector<2x128xf32>
    %cst_29 = arith.constant 1.000000e+00 : f32
    %70 = vector.broadcast %cst_29 : f32 to vector<2x128xf32>
    %71 = arith.addf %70, %69 : vector<2x128xf32>
    %72 = arith.divf %70, %71 : vector<2x128xf32>
    %73 = vector.extract_strided_slice %67 {offsets = [0, 96], sizes = [2, 32], strides = [1, 1]} : vector<2x128xf32> to vector<2x32xf32>
    %74 = math.tanh %73 : vector<2x32xf32>
    %75 = vector.extract_strided_slice %72 {offsets = [0, 0], sizes = [2, 32], strides = [1, 1]} : vector<2x128xf32> to vector<2x32xf32>
    %76 = vector.extract_strided_slice %72 {offsets = [0, 32], sizes = [2, 32], strides = [1, 1]} : vector<2x128xf32> to vector<2x32xf32>
    %77 = vector.extract_strided_slice %72 {offsets = [0, 64], sizes = [2, 32], strides = [1, 1]} : vector<2x128xf32> to vector<2x32xf32>
    %78 = arith.mulf %76, %62 : vector<2x32xf32>
    %79 = arith.mulf %75, %74 : vector<2x32xf32>
    %80 = arith.addf %78, %79 : vector<2x32xf32>
    %81 = math.tanh %80 : vector<2x32xf32>
    %82 = arith.mulf %77, %81 : vector<2x32xf32>
    %cst_30 = arith.constant dense<0.000000e+00> : vector<2x128xf32>
    %83 = tpu.matmul %82, %2, %cst_30 {dimension_numbers = #tpu.dot_dimension_numbers<[1], [0], [0], [1], [0, 0, 1, 1], [], []>} : vector<2x32xf32>, vector<32x128xf32>, vector<2x128xf32> -> vector<2x128xf32>
    %84 = vector.extract_strided_slice %28 {offsets = [6, 0], sizes = [2, 128], strides = [1, 1]} : vector<8x128xf32> to vector<2x128xf32>
    %85 = arith.addf %83, %84 : vector<2x128xf32>
    %86 = arith.negf %85 : vector<2x128xf32>
    %87 = math.exp %86 : vector<2x128xf32>
    %cst_31 = arith.constant 1.000000e+00 : f32
    %88 = vector.broadcast %cst_31 : f32 to vector<2x128xf32>
    %89 = arith.addf %88, %87 : vector<2x128xf32>
    %90 = arith.divf %88, %89 : vector<2x128xf32>
    %91 = vector.extract_strided_slice %85 {offsets = [0, 96], sizes = [2, 32], strides = [1, 1]} : vector<2x128xf32> to vector<2x32xf32>
    %92 = math.tanh %91 : vector<2x32xf32>
    %93 = vector.extract_strided_slice %90 {offsets = [0, 0], sizes = [2, 32], strides = [1, 1]} : vector<2x128xf32> to vector<2x32xf32>
    %94 = vector.extract_strided_slice %90 {offsets = [0, 32], sizes = [2, 32], strides = [1, 1]} : vector<2x128xf32> to vector<2x32xf32>
    %95 = vector.extract_strided_slice %90 {offsets = [0, 64], sizes = [2, 32], strides = [1, 1]} : vector<2x128xf32> to vector<2x32xf32>
    %96 = arith.mulf %94, %80 : vector<2x32xf32>
    %97 = arith.mulf %93, %92 : vector<2x32xf32>
    %98 = arith.addf %96, %97 : vector<2x32xf32>
    %99 = math.tanh %98 : vector<2x32xf32>
    %100 = arith.mulf %95, %99 : vector<2x32xf32>
    %101 = tpu.concatenate %46, %64, %82, %100 in 0 : vector<2x32xf32>, vector<2x32xf32>, vector<2x32xf32>, vector<2x32xf32> -> vector<8x32xf32>
    %cst_32 = arith.constant dense<0.000000e+00> : vector<8x16xf32>
    %102 = tpu.matmul %101, %11, %cst_32 {dimension_numbers = #tpu.dot_dimension_numbers<[1], [0], [0], [1], [0, 0, 1, 1], [], []>} : vector<8x32xf32>, vector<32x16xf32>, vector<8x16xf32> -> vector<8x16xf32>
    %103 = vector.broadcast %12 : vector<1x16xf32> to vector<8x16xf32>
    %104 = arith.addf %102, %103 : vector<8x16xf32>
    %cst_33 = arith.constant dense<0.000000e+00> : vector<8x32xf32>
    %105 = tpu.matmul %104, %13, %cst_33 {dimension_numbers = #tpu.dot_dimension_numbers<[1], [0], [0], [1], [0, 0, 1, 1], [], []>} : vector<8x16xf32>, vector<16x32xf32>, vector<8x32xf32> -> vector<8x32xf32>
    %106 = vector.broadcast %14 : vector<1x32xf32> to vector<8x32xf32>
    %107 = arith.addf %105, %106 : vector<8x32xf32>
    %108 = math.tanh %107 : vector<8x32xf32>
    %cst_34 = arith.constant dense<0.000000e+00> : vector<8x128xf32>
    %109 = tpu.matmul %104, %4, %cst_34 {dimension_numbers = #tpu.dot_dimension_numbers<[1], [0], [0], [1], [0, 0, 1, 1], [], []>} : vector<8x16xf32>, vector<16x128xf32>, vector<8x128xf32> -> vector<8x128xf32>
    %110 = vector.broadcast %6 : vector<1x128xf32> to vector<8x128xf32>
    %111 = arith.addf %109, %110 : vector<8x128xf32>
    %112 = vector.extract_strided_slice %111 {offsets = [0, 0], sizes = [2, 128], strides = [1, 1]} : vector<8x128xf32> to vector<2x128xf32>
    %113 = tpu.concatenate %112, %112, %112, %112 in 0 : vector<2x128xf32>, vector<2x128xf32>, vector<2x128xf32>, vector<2x128xf32> -> vector<8x128xf32>
    %114 = vector.extract_strided_slice %108 {offsets = [0, 0], sizes = [2, 32], strides = [1, 1]} : vector<8x32xf32> to vector<2x32xf32>
    %cst_35 = arith.constant dense<0.000000e+00> : vector<2x128xf32>
    %115 = tpu.matmul %114, %5, %cst_35 {dimension_numbers = #tpu.dot_dimension_numbers<[1], [0], [0], [1], [0, 0, 1, 1], [], []>} : vector<2x32xf32>, vector<32x128xf32>, vector<2x128xf32> -> vector<2x128xf32>
    %116 = vector.extract_strided_slice %113 {offsets = [0, 0], sizes = [2, 128], strides = [1, 1]} : vector<8x128xf32> to vector<2x128xf32>
    %117 = arith.addf %115, %116 : vector<2x128xf32>
    %118 = arith.negf %117 : vector<2x128xf32>
    %119 = math.exp %118 : vector<2x128xf32>
    %cst_36 = arith.constant 1.000000e+00 : f32
    %120 = vector.broadcast %cst_36 : f32 to vector<2x128xf32>
    %121 = arith.addf %120, %119 : vector<2x128xf32>
    %122 = arith.divf %120, %121 : vector<2x128xf32>
    %123 = vector.extract_strided_slice %117 {offsets = [0, 96], sizes = [2, 32], strides = [1, 1]} : vector<2x128xf32> to vector<2x32xf32>
    %124 = math.tanh %123 : vector<2x32xf32>
    %125 = vector.extract_strided_slice %122 {offsets = [0, 0], sizes = [2, 32], strides = [1, 1]} : vector<2x128xf32> to vector<2x32xf32>
    %126 = vector.extract_strided_slice %122 {offsets = [0, 32], sizes = [2, 32], strides = [1, 1]} : vector<2x128xf32> to vector<2x32xf32>
    %127 = vector.extract_strided_slice %122 {offsets = [0, 64], sizes = [2, 32], strides = [1, 1]} : vector<2x128xf32> to vector<2x32xf32>
    %128 = arith.mulf %126, %114 : vector<2x32xf32>
    %129 = arith.mulf %125, %124 : vector<2x32xf32>
    %130 = arith.addf %128, %129 : vector<2x32xf32>
    %131 = math.tanh %130 : vector<2x32xf32>
    %132 = arith.mulf %127, %131 : vector<2x32xf32>
    %cst_37 = arith.constant dense<0.000000e+00> : vector<2x128xf32>
    %133 = tpu.matmul %132, %5, %cst_37 {dimension_numbers = #tpu.dot_dimension_numbers<[1], [0], [0], [1], [0, 0, 1, 1], [], []>} : vector<2x32xf32>, vector<32x128xf32>, vector<2x128xf32> -> vector<2x128xf32>
    %134 = vector.extract_strided_slice %113 {offsets = [2, 0], sizes = [2, 128], strides = [1, 1]} : vector<8x128xf32> to vector<2x128xf32>
    %135 = arith.addf %133, %134 : vector<2x128xf32>
    %136 = arith.negf %135 : vector<2x128xf32>
    %137 = math.exp %136 : vector<2x128xf32>
    %cst_38 = arith.constant 1.000000e+00 : f32
    %138 = vector.broadcast %cst_38 : f32 to vector<2x128xf32>
    %139 = arith.addf %138, %137 : vector<2x128xf32>
    %140 = arith.divf %138, %139 : vector<2x128xf32>
    %141 = vector.extract_strided_slice %135 {offsets = [0, 96], sizes = [2, 32], strides = [1, 1]} : vector<2x128xf32> to vector<2x32xf32>
    %142 = math.tanh %141 : vector<2x32xf32>
    %143 = vector.extract_strided_slice %140 {offsets = [0, 0], sizes = [2, 32], strides = [1, 1]} : vector<2x128xf32> to vector<2x32xf32>
    %144 = vector.extract_strided_slice %140 {offsets = [0, 32], sizes = [2, 32], strides = [1, 1]} : vector<2x128xf32> to vector<2x32xf32>
    %145 = vector.extract_strided_slice %140 {offsets = [0, 64], sizes = [2, 32], strides = [1, 1]} : vector<2x128xf32> to vector<2x32xf32>
    %146 = arith.mulf %144, %130 : vector<2x32xf32>
    %147 = arith.mulf %143, %142 : vector<2x32xf32>
    %148 = arith.addf %146, %147 : vector<2x32xf32>
    %149 = math.tanh %148 : vector<2x32xf32>
    %150 = arith.mulf %145, %149 : vector<2x32xf32>
    %cst_39 = arith.constant dense<0.000000e+00> : vector<2x128xf32>
    %151 = tpu.matmul %150, %5, %cst_39 {dimension_numbers = #tpu.dot_dimension_numbers<[1], [0], [0], [1], [0, 0, 1, 1], [], []>} : vector<2x32xf32>, vector<32x128xf32>, vector<2x128xf32> -> vector<2x128xf32>
    %152 = vector.extract_strided_slice %113 {offsets = [4, 0], sizes = [2, 128], strides = [1, 1]} : vector<8x128xf32> to vector<2x128xf32>
    %153 = arith.addf %151, %152 : vector<2x128xf32>
    %154 = arith.negf %153 : vector<2x128xf32>
    %155 = math.exp %154 : vector<2x128xf32>
    %cst_40 = arith.constant 1.000000e+00 : f32
    %156 = vector.broadcast %cst_40 : f32 to vector<2x128xf32>
    %157 = arith.addf %156, %155 : vector<2x128xf32>
    %158 = arith.divf %156, %157 : vector<2x128xf32>
    %159 = vector.extract_strided_slice %153 {offsets = [0, 96], sizes = [2, 32], strides = [1, 1]} : vector<2x128xf32> to vector<2x32xf32>
    %160 = math.tanh %159 : vector<2x32xf32>
    %161 = vector.extract_strided_slice %158 {offsets = [0, 0], sizes = [2, 32], strides = [1, 1]} : vector<2x128xf32> to vector<2x32xf32>
    %162 = vector.extract_strided_slice %158 {offsets = [0, 32], sizes = [2, 32], strides = [1, 1]} : vector<2x128xf32> to vector<2x32xf32>
    %163 = vector.extract_strided_slice %158 {offsets = [0, 64], sizes = [2, 32], strides = [1, 1]} : vector<2x128xf32> to vector<2x32xf32>
    %164 = arith.mulf %162, %148 : vector<2x32xf32>
    %165 = arith.mulf %161, %160 : vector<2x32xf32>
    %166 = arith.addf %164, %165 : vector<2x32xf32>
    %167 = math.tanh %166 : vector<2x32xf32>
    %168 = arith.mulf %163, %167 : vector<2x32xf32>
    %cst_41 = arith.constant dense<0.000000e+00> : vector<2x128xf32>
    %169 = tpu.matmul %168, %5, %cst_41 {dimension_numbers = #tpu.dot_dimension_numbers<[1], [0], [0], [1], [0, 0, 1, 1], [], []>} : vector<2x32xf32>, vector<32x128xf32>, vector<2x128xf32> -> vector<2x128xf32>
    %170 = vector.extract_strided_slice %113 {offsets = [6, 0], sizes = [2, 128], strides = [1, 1]} : vector<8x128xf32> to vector<2x128xf32>
    %171 = arith.addf %169, %170 : vector<2x128xf32>
    %172 = arith.negf %171 : vector<2x128xf32>
    %173 = math.exp %172 : vector<2x128xf32>
    %cst_42 = arith.constant 1.000000e+00 : f32
    %174 = vector.broadcast %cst_42 : f32 to vector<2x128xf32>
    %175 = arith.addf %174, %173 : vector<2x128xf32>
    %176 = arith.divf %174, %175 : vector<2x128xf32>
    %177 = vector.extract_strided_slice %171 {offsets = [0, 96], sizes = [2, 32], strides = [1, 1]} : vector<2x128xf32> to vector<2x32xf32>
    %178 = math.tanh %177 : vector<2x32xf32>
    %179 = vector.extract_strided_slice %176 {offsets = [0, 0], sizes = [2, 32], strides = [1, 1]} : vector<2x128xf32> to vector<2x32xf32>
    %180 = vector.extract_strided_slice %176 {offsets = [0, 32], sizes = [2, 32], strides = [1, 1]} : vector<2x128xf32> to vector<2x32xf32>
    %181 = vector.extract_strided_slice %176 {offsets = [0, 64], sizes = [2, 32], strides = [1, 1]} : vector<2x128xf32> to vector<2x32xf32>
    %182 = arith.mulf %180, %166 : vector<2x32xf32>
    %183 = arith.mulf %179, %178 : vector<2x32xf32>
    %184 = arith.addf %182, %183 : vector<2x32xf32>
    %185 = math.tanh %184 : vector<2x32xf32>
    %186 = arith.mulf %181, %185 : vector<2x32xf32>
    %187 = tpu.concatenate %132, %150, %168, %186 in 0 : vector<2x32xf32>, vector<2x32xf32>, vector<2x32xf32>, vector<2x32xf32> -> vector<8x32xf32>
    %188 = vector.extract_strided_slice %111 {offsets = [2, 0], sizes = [2, 128], strides = [1, 1]} : vector<8x128xf32> to vector<2x128xf32>
    %cst_43 = arith.constant dense<0.000000e+00> : vector<8x128xf32>
    %189 = tpu.matmul %187, %7, %cst_43 {dimension_numbers = #tpu.dot_dimension_numbers<[1], [0], [0], [1], [0, 0, 1, 1], [], []>} : vector<8x32xf32>, vector<32x128xf32>, vector<8x128xf32> -> vector<8x128xf32>
    %190 = vector.broadcast %8 : vector<1x128xf32> to vector<2x128xf32>
    %191 = arith.addf %188, %190 : vector<2x128xf32>
    %192 = tpu.concatenate %191, %191, %191, %191 in 0 : vector<2x128xf32>, vector<2x128xf32>, vector<2x128xf32>, vector<2x128xf32> -> vector<8x128xf32>
    %193 = arith.addf %189, %192 : vector<8x128xf32>
    %194 = vector.extract_strided_slice %108 {offsets = [2, 0], sizes = [2, 32], strides = [1, 1]} : vector<8x32xf32> to vector<2x32xf32>
    %cst_44 = arith.constant dense<0.000000e+00> : vector<2x128xf32>
    %195 = tpu.matmul %194, %5, %cst_44 {dimension_numbers = #tpu.dot_dimension_numbers<[1], [0], [0], [1], [0, 0, 1, 1], [], []>} : vector<2x32xf32>, vector<32x128xf32>, vector<2x128xf32> -> vector<2x128xf32>
    %196 = vector.extract_strided_slice %193 {offsets = [0, 0], sizes = [2, 128], strides = [1, 1]} : vector<8x128xf32> to vector<2x128xf32>
    %197 = arith.addf %195, %196 : vector<2x128xf32>
    %198 = arith.negf %197 : vector<2x128xf32>
    %199 = math.exp %198 : vector<2x128xf32>
    %cst_45 = arith.constant 1.000000e+00 : f32
    %200 = vector.broadcast %cst_45 : f32 to vector<2x128xf32>
    %201 = arith.addf %200, %199 : vector<2x128xf32>
    %202 = arith.divf %200, %201 : vector<2x128xf32>
    %203 = vector.extract_strided_slice %197 {offsets = [0, 96], sizes = [2, 32], strides = [1, 1]} : vector<2x128xf32> to vector<2x32xf32>
    %204 = math.tanh %203 : vector<2x32xf32>
    %205 = vector.extract_strided_slice %202 {offsets = [0, 0], sizes = [2, 32], strides = [1, 1]} : vector<2x128xf32> to vector<2x32xf32>
    %206 = vector.extract_strided_slice %202 {offsets = [0, 32], sizes = [2, 32], strides = [1, 1]} : vector<2x128xf32> to vector<2x32xf32>
    %207 = vector.extract_strided_slice %202 {offsets = [0, 64], sizes = [2, 32], strides = [1, 1]} : vector<2x128xf32> to vector<2x32xf32>
    %208 = arith.mulf %206, %194 : vector<2x32xf32>
    %209 = arith.mulf %205, %204 : vector<2x32xf32>
    %210 = arith.addf %208, %209 : vector<2x32xf32>
    %211 = math.tanh %210 : vector<2x32xf32>
    %212 = arith.mulf %207, %211 : vector<2x32xf32>
    %cst_46 = arith.constant dense<0.000000e+00> : vector<2x128xf32>
    %213 = tpu.matmul %212, %5, %cst_46 {dimension_numbers = #tpu.dot_dimension_numbers<[1], [0], [0], [1], [0, 0, 1, 1], [], []>} : vector<2x32xf32>, vector<32x128xf32>, vector<2x128xf32> -> vector<2x128xf32>
    %214 = vector.extract_strided_slice %193 {offsets = [2, 0], sizes = [2, 128], strides = [1, 1]} : vector<8x128xf32> to vector<2x128xf32>
    %215 = arith.addf %213, %214 : vector<2x128xf32>
    %216 = arith.negf %215 : vector<2x128xf32>
    %217 = math.exp %216 : vector<2x128xf32>
    %cst_47 = arith.constant 1.000000e+00 : f32
    %218 = vector.broadcast %cst_47 : f32 to vector<2x128xf32>
    %219 = arith.addf %218, %217 : vector<2x128xf32>
    %220 = arith.divf %218, %219 : vector<2x128xf32>
    %221 = vector.extract_strided_slice %215 {offsets = [0, 96], sizes = [2, 32], strides = [1, 1]} : vector<2x128xf32> to vector<2x32xf32>
    %222 = math.tanh %221 : vector<2x32xf32>
    %223 = vector.extract_strided_slice %220 {offsets = [0, 0], sizes = [2, 32], strides = [1, 1]} : vector<2x128xf32> to vector<2x32xf32>
    %224 = vector.extract_strided_slice %220 {offsets = [0, 32], sizes = [2, 32], strides = [1, 1]} : vector<2x128xf32> to vector<2x32xf32>
    %225 = vector.extract_strided_slice %220 {offsets = [0, 64], sizes = [2, 32], strides = [1, 1]} : vector<2x128xf32> to vector<2x32xf32>
    %226 = arith.mulf %224, %210 : vector<2x32xf32>
    %227 = arith.mulf %223, %222 : vector<2x32xf32>
    %228 = arith.addf %226, %227 : vector<2x32xf32>
    %229 = math.tanh %228 : vector<2x32xf32>
    %230 = arith.mulf %225, %229 : vector<2x32xf32>
    %cst_48 = arith.constant dense<0.000000e+00> : vector<2x128xf32>
    %231 = tpu.matmul %230, %5, %cst_48 {dimension_numbers = #tpu.dot_dimension_numbers<[1], [0], [0], [1], [0, 0, 1, 1], [], []>} : vector<2x32xf32>, vector<32x128xf32>, vector<2x128xf32> -> vector<2x128xf32>
    %232 = vector.extract_strided_slice %193 {offsets = [4, 0], sizes = [2, 128], strides = [1, 1]} : vector<8x128xf32> to vector<2x128xf32>
    %233 = arith.addf %231, %232 : vector<2x128xf32>
    %234 = arith.negf %233 : vector<2x128xf32>
    %235 = math.exp %234 : vector<2x128xf32>
    %cst_49 = arith.constant 1.000000e+00 : f32
    %236 = vector.broadcast %cst_49 : f32 to vector<2x128xf32>
    %237 = arith.addf %236, %235 : vector<2x128xf32>
    %238 = arith.divf %236, %237 : vector<2x128xf32>
    %239 = vector.extract_strided_slice %233 {offsets = [0, 96], sizes = [2, 32], strides = [1, 1]} : vector<2x128xf32> to vector<2x32xf32>
    %240 = math.tanh %239 : vector<2x32xf32>
    %241 = vector.extract_strided_slice %238 {offsets = [0, 0], sizes = [2, 32], strides = [1, 1]} : vector<2x128xf32> to vector<2x32xf32>
    %242 = vector.extract_strided_slice %238 {offsets = [0, 32], sizes = [2, 32], strides = [1, 1]} : vector<2x128xf32> to vector<2x32xf32>
    %243 = vector.extract_strided_slice %238 {offsets = [0, 64], sizes = [2, 32], strides = [1, 1]} : vector<2x128xf32> to vector<2x32xf32>
    %244 = arith.mulf %242, %228 : vector<2x32xf32>
    %245 = arith.mulf %241, %240 : vector<2x32xf32>
    %246 = arith.addf %244, %245 : vector<2x32xf32>
    %247 = math.tanh %246 : vector<2x32xf32>
    %248 = arith.mulf %243, %247 : vector<2x32xf32>
    %cst_50 = arith.constant dense<0.000000e+00> : vector<2x128xf32>
    %249 = tpu.matmul %248, %5, %cst_50 {dimension_numbers = #tpu.dot_dimension_numbers<[1], [0], [0], [1], [0, 0, 1, 1], [], []>} : vector<2x32xf32>, vector<32x128xf32>, vector<2x128xf32> -> vector<2x128xf32>
    %250 = vector.extract_strided_slice %193 {offsets = [6, 0], sizes = [2, 128], strides = [1, 1]} : vector<8x128xf32> to vector<2x128xf32>
    %251 = arith.addf %249, %250 : vector<2x128xf32>
    %252 = arith.negf %251 : vector<2x128xf32>
    %253 = math.exp %252 : vector<2x128xf32>
    %cst_51 = arith.constant 1.000000e+00 : f32
    %254 = vector.broadcast %cst_51 : f32 to vector<2x128xf32>
    %255 = arith.addf %254, %253 : vector<2x128xf32>
    %256 = arith.divf %254, %255 : vector<2x128xf32>
    %257 = vector.extract_strided_slice %251 {offsets = [0, 96], sizes = [2, 32], strides = [1, 1]} : vector<2x128xf32> to vector<2x32xf32>
    %258 = math.tanh %257 : vector<2x32xf32>
    %259 = vector.extract_strided_slice %256 {offsets = [0, 0], sizes = [2, 32], strides = [1, 1]} : vector<2x128xf32> to vector<2x32xf32>
    %260 = vector.extract_strided_slice %256 {offsets = [0, 32], sizes = [2, 32], strides = [1, 1]} : vector<2x128xf32> to vector<2x32xf32>
    %261 = vector.extract_strided_slice %256 {offsets = [0, 64], sizes = [2, 32], strides = [1, 1]} : vector<2x128xf32> to vector<2x32xf32>
    %262 = arith.mulf %260, %246 : vector<2x32xf32>
    %263 = arith.mulf %259, %258 : vector<2x32xf32>
    %264 = arith.addf %262, %263 : vector<2x32xf32>
    %265 = math.tanh %264 : vector<2x32xf32>
    %266 = arith.mulf %261, %265 : vector<2x32xf32>
    %267 = tpu.concatenate %212, %230, %248, %266 in 0 : vector<2x32xf32>, vector<2x32xf32>, vector<2x32xf32>, vector<2x32xf32> -> vector<8x32xf32>
    %268 = vector.extract_strided_slice %111 {offsets = [4, 0], sizes = [2, 128], strides = [1, 1]} : vector<8x128xf32> to vector<2x128xf32>
    %cst_52 = arith.constant dense<0.000000e+00> : vector<8x128xf32>
    %269 = tpu.matmul %267, %7, %cst_52 {dimension_numbers = #tpu.dot_dimension_numbers<[1], [0], [0], [1], [0, 0, 1, 1], [], []>} : vector<8x32xf32>, vector<32x128xf32>, vector<8x128xf32> -> vector<8x128xf32>
    %270 = vector.broadcast %8 : vector<1x128xf32> to vector<2x128xf32>
    %271 = arith.addf %268, %270 : vector<2x128xf32>
    %272 = tpu.concatenate %271, %271, %271, %271 in 0 : vector<2x128xf32>, vector<2x128xf32>, vector<2x128xf32>, vector<2x128xf32> -> vector<8x128xf32>
    %273 = arith.addf %269, %272 : vector<8x128xf32>
    %274 = vector.extract_strided_slice %108 {offsets = [4, 0], sizes = [2, 32], strides = [1, 1]} : vector<8x32xf32> to vector<2x32xf32>
    %cst_53 = arith.constant dense<0.000000e+00> : vector<2x128xf32>
    %275 = tpu.matmul %274, %5, %cst_53 {dimension_numbers = #tpu.dot_dimension_numbers<[1], [0], [0], [1], [0, 0, 1, 1], [], []>} : vector<2x32xf32>, vector<32x128xf32>, vector<2x128xf32> -> vector<2x128xf32>
    %276 = vector.extract_strided_slice %273 {offsets = [0, 0], sizes = [2, 128], strides = [1, 1]} : vector<8x128xf32> to vector<2x128xf32>
    %277 = arith.addf %275, %276 : vector<2x128xf32>
    %278 = arith.negf %277 : vector<2x128xf32>
    %279 = math.exp %278 : vector<2x128xf32>
    %cst_54 = arith.constant 1.000000e+00 : f32
    %280 = vector.broadcast %cst_54 : f32 to vector<2x128xf32>
    %281 = arith.addf %280, %279 : vector<2x128xf32>
    %282 = arith.divf %280, %281 : vector<2x128xf32>
    %283 = vector.extract_strided_slice %277 {offsets = [0, 96], sizes = [2, 32], strides = [1, 1]} : vector<2x128xf32> to vector<2x32xf32>
    %284 = math.tanh %283 : vector<2x32xf32>
    %285 = vector.extract_strided_slice %282 {offsets = [0, 0], sizes = [2, 32], strides = [1, 1]} : vector<2x128xf32> to vector<2x32xf32>
    %286 = vector.extract_strided_slice %282 {offsets = [0, 32], sizes = [2, 32], strides = [1, 1]} : vector<2x128xf32> to vector<2x32xf32>
    %287 = vector.extract_strided_slice %282 {offsets = [0, 64], sizes = [2, 32], strides = [1, 1]} : vector<2x128xf32> to vector<2x32xf32>
    %288 = arith.mulf %286, %274 : vector<2x32xf32>
    %289 = arith.mulf %285, %284 : vector<2x32xf32>
    %290 = arith.addf %288, %289 : vector<2x32xf32>
    %291 = math.tanh %290 : vector<2x32xf32>
    %292 = arith.mulf %287, %291 : vector<2x32xf32>
    %cst_55 = arith.constant dense<0.000000e+00> : vector<2x128xf32>
    %293 = tpu.matmul %292, %5, %cst_55 {dimension_numbers = #tpu.dot_dimension_numbers<[1], [0], [0], [1], [0, 0, 1, 1], [], []>} : vector<2x32xf32>, vector<32x128xf32>, vector<2x128xf32> -> vector<2x128xf32>
    %294 = vector.extract_strided_slice %273 {offsets = [2, 0], sizes = [2, 128], strides = [1, 1]} : vector<8x128xf32> to vector<2x128xf32>
    %295 = arith.addf %293, %294 : vector<2x128xf32>
    %296 = arith.negf %295 : vector<2x128xf32>
    %297 = math.exp %296 : vector<2x128xf32>
    %cst_56 = arith.constant 1.000000e+00 : f32
    %298 = vector.broadcast %cst_56 : f32 to vector<2x128xf32>
    %299 = arith.addf %298, %297 : vector<2x128xf32>
    %300 = arith.divf %298, %299 : vector<2x128xf32>
    %301 = vector.extract_strided_slice %295 {offsets = [0, 96], sizes = [2, 32], strides = [1, 1]} : vector<2x128xf32> to vector<2x32xf32>
    %302 = math.tanh %301 : vector<2x32xf32>
    %303 = vector.extract_strided_slice %300 {offsets = [0, 0], sizes = [2, 32], strides = [1, 1]} : vector<2x128xf32> to vector<2x32xf32>
    %304 = vector.extract_strided_slice %300 {offsets = [0, 32], sizes = [2, 32], strides = [1, 1]} : vector<2x128xf32> to vector<2x32xf32>
    %305 = vector.extract_strided_slice %300 {offsets = [0, 64], sizes = [2, 32], strides = [1, 1]} : vector<2x128xf32> to vector<2x32xf32>
    %306 = arith.mulf %304, %290 : vector<2x32xf32>
    %307 = arith.mulf %303, %302 : vector<2x32xf32>
    %308 = arith.addf %306, %307 : vector<2x32xf32>
    %309 = math.tanh %308 : vector<2x32xf32>
    %310 = arith.mulf %305, %309 : vector<2x32xf32>
    %cst_57 = arith.constant dense<0.000000e+00> : vector<2x128xf32>
    %311 = tpu.matmul %310, %5, %cst_57 {dimension_numbers = #tpu.dot_dimension_numbers<[1], [0], [0], [1], [0, 0, 1, 1], [], []>} : vector<2x32xf32>, vector<32x128xf32>, vector<2x128xf32> -> vector<2x128xf32>
    %312 = vector.extract_strided_slice %273 {offsets = [4, 0], sizes = [2, 128], strides = [1, 1]} : vector<8x128xf32> to vector<2x128xf32>
    %313 = arith.addf %311, %312 : vector<2x128xf32>
    %314 = arith.negf %313 : vector<2x128xf32>
    %315 = math.exp %314 : vector<2x128xf32>
    %cst_58 = arith.constant 1.000000e+00 : f32
    %316 = vector.broadcast %cst_58 : f32 to vector<2x128xf32>
    %317 = arith.addf %316, %315 : vector<2x128xf32>
    %318 = arith.divf %316, %317 : vector<2x128xf32>
    %319 = vector.extract_strided_slice %313 {offsets = [0, 96], sizes = [2, 32], strides = [1, 1]} : vector<2x128xf32> to vector<2x32xf32>
    %320 = math.tanh %319 : vector<2x32xf32>
    %321 = vector.extract_strided_slice %318 {offsets = [0, 0], sizes = [2, 32], strides = [1, 1]} : vector<2x128xf32> to vector<2x32xf32>
    %322 = vector.extract_strided_slice %318 {offsets = [0, 32], sizes = [2, 32], strides = [1, 1]} : vector<2x128xf32> to vector<2x32xf32>
    %323 = vector.extract_strided_slice %318 {offsets = [0, 64], sizes = [2, 32], strides = [1, 1]} : vector<2x128xf32> to vector<2x32xf32>
    %324 = arith.mulf %322, %308 : vector<2x32xf32>
    %325 = arith.mulf %321, %320 : vector<2x32xf32>
    %326 = arith.addf %324, %325 : vector<2x32xf32>
    %327 = math.tanh %326 : vector<2x32xf32>
    %328 = arith.mulf %323, %327 : vector<2x32xf32>
    %cst_59 = arith.constant dense<0.000000e+00> : vector<2x128xf32>
    %329 = tpu.matmul %328, %5, %cst_59 {dimension_numbers = #tpu.dot_dimension_numbers<[1], [0], [0], [1], [0, 0, 1, 1], [], []>} : vector<2x32xf32>, vector<32x128xf32>, vector<2x128xf32> -> vector<2x128xf32>
    %330 = vector.extract_strided_slice %273 {offsets = [6, 0], sizes = [2, 128], strides = [1, 1]} : vector<8x128xf32> to vector<2x128xf32>
    %331 = arith.addf %329, %330 : vector<2x128xf32>
    %332 = arith.negf %331 : vector<2x128xf32>
    %333 = math.exp %332 : vector<2x128xf32>
    %cst_60 = arith.constant 1.000000e+00 : f32
    %334 = vector.broadcast %cst_60 : f32 to vector<2x128xf32>
    %335 = arith.addf %334, %333 : vector<2x128xf32>
    %336 = arith.divf %334, %335 : vector<2x128xf32>
    %337 = vector.extract_strided_slice %331 {offsets = [0, 96], sizes = [2, 32], strides = [1, 1]} : vector<2x128xf32> to vector<2x32xf32>
    %338 = math.tanh %337 : vector<2x32xf32>
    %339 = vector.extract_strided_slice %336 {offsets = [0, 0], sizes = [2, 32], strides = [1, 1]} : vector<2x128xf32> to vector<2x32xf32>
    %340 = vector.extract_strided_slice %336 {offsets = [0, 32], sizes = [2, 32], strides = [1, 1]} : vector<2x128xf32> to vector<2x32xf32>
    %341 = vector.extract_strided_slice %336 {offsets = [0, 64], sizes = [2, 32], strides = [1, 1]} : vector<2x128xf32> to vector<2x32xf32>
    %342 = arith.mulf %340, %326 : vector<2x32xf32>
    %343 = arith.mulf %339, %338 : vector<2x32xf32>
    %344 = arith.addf %342, %343 : vector<2x32xf32>
    %345 = math.tanh %344 : vector<2x32xf32>
    %346 = arith.mulf %341, %345 : vector<2x32xf32>
    %347 = tpu.concatenate %292, %310, %328, %346 in 0 : vector<2x32xf32>, vector<2x32xf32>, vector<2x32xf32>, vector<2x32xf32> -> vector<8x32xf32>
    %348 = vector.extract_strided_slice %111 {offsets = [6, 0], sizes = [2, 128], strides = [1, 1]} : vector<8x128xf32> to vector<2x128xf32>
    %cst_61 = arith.constant dense<0.000000e+00> : vector<8x128xf32>
    %349 = tpu.matmul %347, %7, %cst_61 {dimension_numbers = #tpu.dot_dimension_numbers<[1], [0], [0], [1], [0, 0, 1, 1], [], []>} : vector<8x32xf32>, vector<32x128xf32>, vector<8x128xf32> -> vector<8x128xf32>
    %350 = vector.broadcast %8 : vector<1x128xf32> to vector<2x128xf32>
    %351 = arith.addf %348, %350 : vector<2x128xf32>
    %352 = tpu.concatenate %351, %351, %351, %351 in 0 : vector<2x128xf32>, vector<2x128xf32>, vector<2x128xf32>, vector<2x128xf32> -> vector<8x128xf32>
    %353 = arith.addf %349, %352 : vector<8x128xf32>
    %354 = vector.extract_strided_slice %108 {offsets = [6, 0], sizes = [2, 32], strides = [1, 1]} : vector<8x32xf32> to vector<2x32xf32>
    %cst_62 = arith.constant dense<0.000000e+00> : vector<2x128xf32>
    %355 = tpu.matmul %354, %5, %cst_62 {dimension_numbers = #tpu.dot_dimension_numbers<[1], [0], [0], [1], [0, 0, 1, 1], [], []>} : vector<2x32xf32>, vector<32x128xf32>, vector<2x128xf32> -> vector<2x128xf32>
    %356 = vector.extract_strided_slice %353 {offsets = [0, 0], sizes = [2, 128], strides = [1, 1]} : vector<8x128xf32> to vector<2x128xf32>
    %357 = arith.addf %355, %356 : vector<2x128xf32>
    %358 = arith.negf %357 : vector<2x128xf32>
    %359 = math.exp %358 : vector<2x128xf32>
    %cst_63 = arith.constant 1.000000e+00 : f32
    %360 = vector.broadcast %cst_63 : f32 to vector<2x128xf32>
    %361 = arith.addf %360, %359 : vector<2x128xf32>
    %362 = arith.divf %360, %361 : vector<2x128xf32>
    %363 = vector.extract_strided_slice %357 {offsets = [0, 96], sizes = [2, 32], strides = [1, 1]} : vector<2x128xf32> to vector<2x32xf32>
    %364 = math.tanh %363 : vector<2x32xf32>
    %365 = vector.extract_strided_slice %362 {offsets = [0, 0], sizes = [2, 32], strides = [1, 1]} : vector<2x128xf32> to vector<2x32xf32>
    %366 = vector.extract_strided_slice %362 {offsets = [0, 32], sizes = [2, 32], strides = [1, 1]} : vector<2x128xf32> to vector<2x32xf32>
    %367 = vector.extract_strided_slice %362 {offsets = [0, 64], sizes = [2, 32], strides = [1, 1]} : vector<2x128xf32> to vector<2x32xf32>
    %368 = arith.mulf %366, %354 : vector<2x32xf32>
    %369 = arith.mulf %365, %364 : vector<2x32xf32>
    %370 = arith.addf %368, %369 : vector<2x32xf32>
    %371 = math.tanh %370 : vector<2x32xf32>
    %372 = arith.mulf %367, %371 : vector<2x32xf32>
    %cst_64 = arith.constant dense<0.000000e+00> : vector<2x128xf32>
    %373 = tpu.matmul %372, %5, %cst_64 {dimension_numbers = #tpu.dot_dimension_numbers<[1], [0], [0], [1], [0, 0, 1, 1], [], []>} : vector<2x32xf32>, vector<32x128xf32>, vector<2x128xf32> -> vector<2x128xf32>
    %374 = vector.extract_strided_slice %353 {offsets = [2, 0], sizes = [2, 128], strides = [1, 1]} : vector<8x128xf32> to vector<2x128xf32>
    %375 = arith.addf %373, %374 : vector<2x128xf32>
    %376 = arith.negf %375 : vector<2x128xf32>
    %377 = math.exp %376 : vector<2x128xf32>
    %cst_65 = arith.constant 1.000000e+00 : f32
    %378 = vector.broadcast %cst_65 : f32 to vector<2x128xf32>
    %379 = arith.addf %378, %377 : vector<2x128xf32>
    %380 = arith.divf %378, %379 : vector<2x128xf32>
    %381 = vector.extract_strided_slice %375 {offsets = [0, 96], sizes = [2, 32], strides = [1, 1]} : vector<2x128xf32> to vector<2x32xf32>
    %382 = math.tanh %381 : vector<2x32xf32>
    %383 = vector.extract_strided_slice %380 {offsets = [0, 0], sizes = [2, 32], strides = [1, 1]} : vector<2x128xf32> to vector<2x32xf32>
    %384 = vector.extract_strided_slice %380 {offsets = [0, 32], sizes = [2, 32], strides = [1, 1]} : vector<2x128xf32> to vector<2x32xf32>
    %385 = vector.extract_strided_slice %380 {offsets = [0, 64], sizes = [2, 32], strides = [1, 1]} : vector<2x128xf32> to vector<2x32xf32>
    %386 = arith.mulf %384, %370 : vector<2x32xf32>
    %387 = arith.mulf %383, %382 : vector<2x32xf32>
    %388 = arith.addf %386, %387 : vector<2x32xf32>
    %389 = math.tanh %388 : vector<2x32xf32>
    %390 = arith.mulf %385, %389 : vector<2x32xf32>
    %cst_66 = arith.constant dense<0.000000e+00> : vector<2x128xf32>
    %391 = tpu.matmul %390, %5, %cst_66 {dimension_numbers = #tpu.dot_dimension_numbers<[1], [0], [0], [1], [0, 0, 1, 1], [], []>} : vector<2x32xf32>, vector<32x128xf32>, vector<2x128xf32> -> vector<2x128xf32>
    %392 = vector.extract_strided_slice %353 {offsets = [4, 0], sizes = [2, 128], strides = [1, 1]} : vector<8x128xf32> to vector<2x128xf32>
    %393 = arith.addf %391, %392 : vector<2x128xf32>
    %394 = arith.negf %393 : vector<2x128xf32>
    %395 = math.exp %394 : vector<2x128xf32>
    %cst_67 = arith.constant 1.000000e+00 : f32
    %396 = vector.broadcast %cst_67 : f32 to vector<2x128xf32>
    %397 = arith.addf %396, %395 : vector<2x128xf32>
    %398 = arith.divf %396, %397 : vector<2x128xf32>
    %399 = vector.extract_strided_slice %393 {offsets = [0, 96], sizes = [2, 32], strides = [1, 1]} : vector<2x128xf32> to vector<2x32xf32>
    %400 = math.tanh %399 : vector<2x32xf32>
    %401 = vector.extract_strided_slice %398 {offsets = [0, 0], sizes = [2, 32], strides = [1, 1]} : vector<2x128xf32> to vector<2x32xf32>
    %402 = vector.extract_strided_slice %398 {offsets = [0, 32], sizes = [2, 32], strides = [1, 1]} : vector<2x128xf32> to vector<2x32xf32>
    %403 = vector.extract_strided_slice %398 {offsets = [0, 64], sizes = [2, 32], strides = [1, 1]} : vector<2x128xf32> to vector<2x32xf32>
    %404 = arith.mulf %402, %388 : vector<2x32xf32>
    %405 = arith.mulf %401, %400 : vector<2x32xf32>
    %406 = arith.addf %404, %405 : vector<2x32xf32>
    %407 = math.tanh %406 : vector<2x32xf32>
    %408 = arith.mulf %403, %407 : vector<2x32xf32>
    %cst_68 = arith.constant dense<0.000000e+00> : vector<2x128xf32>
    %409 = tpu.matmul %408, %5, %cst_68 {dimension_numbers = #tpu.dot_dimension_numbers<[1], [0], [0], [1], [0, 0, 1, 1], [], []>} : vector<2x32xf32>, vector<32x128xf32>, vector<2x128xf32> -> vector<2x128xf32>
    %410 = vector.extract_strided_slice %353 {offsets = [6, 0], sizes = [2, 128], strides = [1, 1]} : vector<8x128xf32> to vector<2x128xf32>
    %411 = arith.addf %409, %410 : vector<2x128xf32>
    %412 = arith.negf %411 : vector<2x128xf32>
    %413 = math.exp %412 : vector<2x128xf32>
    %cst_69 = arith.constant 1.000000e+00 : f32
    %414 = vector.broadcast %cst_69 : f32 to vector<2x128xf32>
    %415 = arith.addf %414, %413 : vector<2x128xf32>
    %416 = arith.divf %414, %415 : vector<2x128xf32>
    %417 = vector.extract_strided_slice %411 {offsets = [0, 96], sizes = [2, 32], strides = [1, 1]} : vector<2x128xf32> to vector<2x32xf32>
    %418 = math.tanh %417 : vector<2x32xf32>
    %419 = vector.extract_strided_slice %416 {offsets = [0, 0], sizes = [2, 32], strides = [1, 1]} : vector<2x128xf32> to vector<2x32xf32>
    %420 = vector.extract_strided_slice %416 {offsets = [0, 32], sizes = [2, 32], strides = [1, 1]} : vector<2x128xf32> to vector<2x32xf32>
    %421 = vector.extract_strided_slice %416 {offsets = [0, 64], sizes = [2, 32], strides = [1, 1]} : vector<2x128xf32> to vector<2x32xf32>
    %422 = arith.mulf %420, %406 : vector<2x32xf32>
    %423 = arith.mulf %419, %418 : vector<2x32xf32>
    %424 = arith.addf %422, %423 : vector<2x32xf32>
    %425 = math.tanh %424 : vector<2x32xf32>
    %426 = arith.mulf %421, %425 : vector<2x32xf32>
    %427 = tpu.concatenate %372, %390, %408, %426 in 0 : vector<2x32xf32>, vector<2x32xf32>, vector<2x32xf32>, vector<2x32xf32> -> vector<8x32xf32>
    %428 = tpu.concatenate %187, %267, %347, %427 in 0 : vector<8x32xf32>, vector<8x32xf32>, vector<8x32xf32>, vector<8x32xf32> -> vector<32x32xf32>
    %cst_70 = arith.constant dense<0.000000e+00> : vector<32x8xf32>
    %429 = tpu.matmul %428, %15, %cst_70 {dimension_numbers = #tpu.dot_dimension_numbers<[1], [0], [0], [1], [0, 0, 1, 1], [], []>} : vector<32x32xf32>, vector<32x8xf32>, vector<32x8xf32> -> vector<32x8xf32>
    %430 = vector.broadcast %16 : vector<1x8xf32> to vector<32x8xf32>
    %431 = arith.addf %429, %430 : vector<32x8xf32>
    %432 = vector.extract_strided_slice %431 {offsets = [0, 0], sizes = [2, 8], strides = [1, 1]} : vector<32x8xf32> to vector<2x8xf32>
    %433 = vector.extract_strided_slice %431 {offsets = [2, 0], sizes = [2, 8], strides = [1, 1]} : vector<32x8xf32> to vector<2x8xf32>
    %434 = vector.extract_strided_slice %431 {offsets = [4, 0], sizes = [2, 8], strides = [1, 1]} : vector<32x8xf32> to vector<2x8xf32>
    %435 = vector.extract_strided_slice %431 {offsets = [6, 0], sizes = [2, 8], strides = [1, 1]} : vector<32x8xf32> to vector<2x8xf32>
    %436 = vector.extract_strided_slice %431 {offsets = [8, 0], sizes = [2, 8], strides = [1, 1]} : vector<32x8xf32> to vector<2x8xf32>
    %437 = vector.extract_strided_slice %431 {offsets = [10, 0], sizes = [2, 8], strides = [1, 1]} : vector<32x8xf32> to vector<2x8xf32>
    %438 = vector.extract_strided_slice %431 {offsets = [12, 0], sizes = [2, 8], strides = [1, 1]} : vector<32x8xf32> to vector<2x8xf32>
    %439 = vector.extract_strided_slice %431 {offsets = [14, 0], sizes = [2, 8], strides = [1, 1]} : vector<32x8xf32> to vector<2x8xf32>
    %440 = vector.extract_strided_slice %431 {offsets = [16, 0], sizes = [2, 8], strides = [1, 1]} : vector<32x8xf32> to vector<2x8xf32>
    %441 = vector.extract_strided_slice %431 {offsets = [18, 0], sizes = [2, 8], strides = [1, 1]} : vector<32x8xf32> to vector<2x8xf32>
    %442 = vector.extract_strided_slice %431 {offsets = [20, 0], sizes = [2, 8], strides = [1, 1]} : vector<32x8xf32> to vector<2x8xf32>
    %443 = vector.extract_strided_slice %431 {offsets = [22, 0], sizes = [2, 8], strides = [1, 1]} : vector<32x8xf32> to vector<2x8xf32>
    %444 = vector.extract_strided_slice %431 {offsets = [24, 0], sizes = [2, 8], strides = [1, 1]} : vector<32x8xf32> to vector<2x8xf32>
    %445 = vector.extract_strided_slice %431 {offsets = [26, 0], sizes = [2, 8], strides = [1, 1]} : vector<32x8xf32> to vector<2x8xf32>
    %446 = vector.extract_strided_slice %431 {offsets = [28, 0], sizes = [2, 8], strides = [1, 1]} : vector<32x8xf32> to vector<2x8xf32>
    %447 = vector.extract_strided_slice %431 {offsets = [30, 0], sizes = [2, 8], strides = [1, 1]} : vector<32x8xf32> to vector<2x8xf32>
    %448 = tpu.concatenate %432, %433, %434, %435, %436, %437, %438, %439, %440, %441, %442, %443, %444, %445, %446, %447 in 1 : vector<2x8xf32>, vector<2x8xf32>, vector<2x8xf32>, vector<2x8xf32>, vector<2x8xf32>, vector<2x8xf32>, vector<2x8xf32>, vector<2x8xf32>, vector<2x8xf32>, vector<2x8xf32>, vector<2x8xf32>, vector<2x8xf32>, vector<2x8xf32>, vector<2x8xf32>, vector<2x8xf32>, vector<2x8xf32> -> vector<2x128xf32>
    %c0_71 = arith.constant 0 : index
    %c0_72 = arith.constant 0 : index
    %449 = vector.load %arg4[%c0_71, %c0_72] : memref<2x128xf32, #tpu.memory_space<vmem>>, vector<2x128xf32>
    tpu.vector_store %arg4[%c0_71, %c0_72], %448 {strides = array<i32>} : memref<2x128xf32, #tpu.memory_space<vmem>>, vector<2x128xf32>,
    return
  }
}

</mosaic_0001>

<bundles_post_ra>
// kernel: tpu_custom_call.1
= control target key start
LH: loop header
LB: loop body
LE: loop exit
PB: predicated region body
PF: predicated region fallthrough
CT: control target
= control target key end

     0   :  { %vm54_vm0 = vcmask 130048   ;;  %s2044_s21 = smov 124   ;;  %s2045_s22 = smov 116   ;;  %s2558_s0 = inlined_call_operand.vmem [shape: f32[2,16], index: 0, kind: input, shape index: {}]   ;;  %s2559_s1 = inlined_call_operand.vmem [shape: f32[48,128], index: 1, kind: input, shape index: {}]   ;;  %s2560_s2 = inlined_call_operand.vmem [shape: f32[104,128], index: 2, kind: input, shape index: {}]   ;;  %s2561_s3 = inlined_call_operand.vmem [shape: f32[128,32], index: 3, kind: input, shape index: {}]   ;;  %s2562_s4 = inlined_call_operand.hbm [shape: f32[2,128], index: 4, kind: output, shape index: {}]  }
   0x1   :  { %v38_v0 = vld [vmem:[%s2561_s3 + $0x8] sm:$0xff]  ;;  %v37_v1 = vld [vmem:[%s2561_s3] sm:$0xff] }
   0x2   :  { %v18_v2 = vld [vmem:[%s2558_s0] sm:$0x3]  ;;  %72 = vmatpush.msra.mxu2 %v38_v0 }
   0x3   :  { %v79_v3 = vrot.slane %v18_v2, 6  ;;  %v87_v4 = vrot.slane %v18_v2, 2 }
   0x4   :  { %73 = vmatpush.msra.mxu2 %v37_v1 }
   0x5   :  { %80 = vrot.lane.b32.xlu0 %v79_v3, %s2044_s21  ;;  %1772 = vmatmul.msk.f32.vlgmr.msra.gmra.mxu2 %vm54_vm0, %v18_v2 }
   0x6   :  { %88 = vrot.lane.b32.xlu1 %v87_v4, %s2045_s22 }
   0x7   :  { %9 = vsyncpa [#allocation3], 0  ;;  %v83_v5 = vrot.slane %v18_v2, 4  ;;  %s2046_s23 = smov 120   ;;  %vm93_vm1 = vcmask 1043456   ;;  %v23_v7 = vld [vmem:[%s2559_s1 + $0x20] sm:$0xff] }
   0x8   :  { %v19_v6 = vld [vmem:[%s2559_s1] sm:$0xf]  ;;  %141 = vmatpush.msrb.mxu2 %v23_v7  ;;  %v22_v8 = vld [vmem:[%s2559_s1 + $0x18] sm:$0xff]  ;;  %v21_v9 = vld [vmem:[%s2559_s1 + $0x10] sm:$0xff]  ;;  %273 = vmatpush.msra.mxu1 %v23_v7  ;;  %vm91_vm2 = vcmask 1041408   ;;  %vm95_vm3 = vcmask 1045504  }
   0x9   :  { %1773 = vmatpush.msk.msra.mxu3 %vm93_vm1, %v19_v6  ;;  %337 = vmatpush.msra.mxu0 %v23_v7  ;;  %v20_v10 = vld [vmem:[%s2559_s1 + $0x8] sm:$0xff]  ;;  %vm98_vm4 = vcmask 31744   ;;  %v1847_v17 = vld [vmem:[%s2561_s3 + $0x10] ss:$0 sm:$0xff]  ;;  %vm125_vm5 = vcmask 261120   ;;  %s2047_s9 = smov 32  }
   0xa   :  { %142 = vmatpush.msrb.mxu2 %v22_v8  ;;  %274 = vmatpush.msra.mxu1 %v22_v8  ;;  %v1848_v21 = vld [vmem:[%s2559_s1 + $0x28] ss:$0 sm:$0xff]  ;;  %s2048_s1 = smov 64   ;;  %s2049_s11 = smov 8  }
   0xb   :  { %209 = vmatpush.msrb.mxu3 %v23_v7  ;;  %338 = vmatpush.msra.mxu0 %v22_v8  ;;  %s2050_s12 = smov 56   ;;  %s2051_s13 = smov 80  }
   0xc   :  { %143 = vmatpush.msrb.mxu2 %v21_v9  ;;  %275 = vmatpush.msra.mxu1 %v21_v9  ;;  %s2053_s14 = smov 40   ;;  %s2054_s15 = smov 88  }
   0xd   :  { %84 = vrot.lane.b32.xlu0 %v83_v5, %s2046_s23  ;;  %210 = vmatpush.msrb.mxu3 %v22_v8  ;;  %s2056_s16 = smov 48   ;;  %s2057_s17 = smov 72  }
   0xe   :  { %339 = vmatpush.msra.mxu0 %v21_v9  ;;  %144 = vmatpush.msrb.mxu2 %v20_v10  ;;  %s2058_s18 = smov 96   ;;  %s2060_s19 = smov 104  }
   0xf   :  { %211 = vmatpush.msrb.mxu3 %v21_v9  ;;  %276 = vmatpush.msra.mxu1 %v20_v10  ;;  %s1763_s24 = sshll.u32 %s2562_s4, 4  ;;  %s1764_s24 = int_to_ptr.hbm [resolvable:$true] %s1763_s24 }
  0x10   :  { %340 = vmatpush.msra.mxu0 %v20_v10 }
  0x11   :  { %212 = vmatpush.msrb.mxu3 %v20_v10 }
  0x77   :  { %v81_v11 = vpop.permute.xlu0 %80 }
  0x78   :  { %v92_v12 = vsel %vm91_vm2, %v18_v2, %v81_v11  ;;  %v89_v13 = vpop.permute.xlu1 %88 }
  0x7f   :  { %v85_v14 = vpop.permute.xlu0 %84 }
  0x80   :  { %v94_v15 = vsel %vm93_vm1, %v92_v12, %v85_v14 }
  0x81   :  { %v96_v16 = vsel %vm95_vm3, %v94_v15, %v89_v13 }
  0x82   :  { %1774 = vmatmul.msk.f32.vlgmr.msra.gmra.mxu3 %vm98_vm4, %v96_v16 }
  0x88   :  { %v75_v18 = vpop.f32.mrf.mxu2 }
  0x89   :  { %v76_v19 = vadd.f32 %v1847_v17, %v75_v18 }
  0x8b   :  { %1854 = vtanh.f32 %v76_v19 }
  0x91   :  { %v1855_v20 = vpop.eup %1854 }
  0x92   :  { %169 = vrot.lane.b32.xlu2 %v1855_v20, %s2047_s9  ;;  %1775 = vmatmul.msk.f32.vlgmr.msrb.gmra.mxu2 %vm125_vm5, %v1855_v20 }
  0xec   :  { %v170_v42 = vpop.permute.xlu2 %169 }
 0x105   :  { %v122_v22 = vpop.f32.mrf.mxu3 }
 0x106   :  { %v2125_v23 = vadd.f32 %v1848_v21, %v122_v22 }
 0x108   :  { %v193_v50 = vrot.slane %v2125_v23, 2  ;;  %v257_v12 = vrot.slane %v2125_v23, 4 }
 0x115   :  { %v146_v24 = vpop.f32.mrf.mxu2 }
 0x116   :  { %v147_v25 = vadd.f32 %v146_v24, %v2125_v23 }
 0x118   :  { %1856 = vtanh.f32 %v147_v25  ;;  %v1776_v27 = vmul.f32 -1.442695, %v147_v25 }
 0x11a   :  { %1858 = vpow2.f32 %v1776_v27 }
 0x11e   :  { %v1857_v26 = vpop.eup %1856 }
 0x11f   :  { %174 = vrot.lane.b32.xlu1 %v1857_v26, %s2047_s9 }
 0x120   :  { %v1859_v28 = vpop.eup %1858 }
 0x121   :  { %v152_v29 = vadd.f32 1.0, %v1859_v28 }
 0x123   :  { %1860 = vrcp.f32 %v152_v29  ;;  %v164_v35 = vand.u32 2147483648, %v152_v29  ;;  %vm158_vm7 = vweird.f32 %v152_v29  ;;  %v162_v36 = vand.u32 2147483647, %v152_v29 }
 0x125   :  { %v165_v38 = vor.u32 1.1754944e-38, %v164_v35  ;;  %vm163_vm9 = vcmp.eq.f32.partialorder %v162_v36, 8.507059e+37 }
 0x129   :  { %v1861_v30 = vpop.eup %1860 }
 0x12a   :  { %v154_v31 = vmul.f32 %v1861_v30, %v152_v29  ;;  %vm159_vm6 = vweird.f32 %v1861_v30 }
 0x12b   :  { %vm160_vm8 = vmor %vm158_vm7, %vm159_vm6 }
 0x12c   :  { %v155_v32 = vsub.f32 1.0, %v154_v31 }
 0x12e   :  { %v156_v33 = vmul.f32 %v1861_v30, %v155_v32 }
 0x130   :  { %v157_v34 = vadd.f32 %v1861_v30, %v156_v33 }
 0x132   :  { %v161_v37 = vsel %vm160_vm8, %v1861_v30, %v157_v34 }
 0x133   :  { %v166_v40 = vsel %vm163_vm9, %v165_v38, %v161_v37 }
 0x134   :  { %v172_v43 = vmul.f32 %v170_v42, %v166_v40 }
 0x191   :  { %v175_v39 = vpop.permute.xlu1 %174 }
 0x192   :  { %v177_v41 = vmul.f32 %v175_v39, %v166_v40 }
 0x194   :  { %179 = vrot.lane.b32.xlu2 %v177_v41, %s2047_s9 }
 0x1ee   :  { %v180_v44 = vpop.permute.xlu2 %179 }
 0x1ef   :  { %v182_v45 = vadd.f32 %v180_v44, %v172_v43  ;;  %v321_v43 = vrot.slane %v2125_v23, 6 }
 0x1f1   :  { %1862 = vtanh.f32 %v182_v45 }
 0x1f7   :  { %v1863_v46 = vpop.eup %1862 }
 0x1f8   :  { %185 = vrot.lane.b32.xlu0 %v1863_v46, %s2047_s9 }
 0x26a   :  { %v186_v47 = vpop.permute.xlu0 %185 }
 0x26b   :  { %v2131_v48 = vmul.f32 %v186_v47, %v166_v40 }
 0x26d   :  { %190 = vrot.lane.b32.xlu1 %v2131_v48, %s2048_s1 }
 0x2df   :  { %v191_v49 = vpop.permute.xlu1 %190 }
 0x2e0   :  { %1777 = vmatmul.msk.f32.vlgmr.msrb.gmra.mxu3 %vm125_vm5, %v191_v49 }
 0x363   :  { %v214_v51 = vpop.f32.mrf.mxu3 }
 0x364   :  { %v215_v52 = vadd.f32 %v214_v51, %v193_v50 }
 0x366   :  { %1864 = vtanh.f32 %v215_v52  ;;  %v1778_v54 = vmul.f32 -1.442695, %v215_v52 }
 0x368   :  { %1866 = vpow2.f32 %v1778_v54 }
 0x36c   :  { %v1865_v53 = vpop.eup %1864 }
 0x36d   :  { %239 = vrot.lane.b32.xlu2 %v1865_v53, %s2047_s9 }
 0x36e   :  { %v1867_v55 = vpop.eup %1866 }
 0x36f   :  { %v220_v56 = vadd.f32 1.0, %v1867_v55 }
 0x371   :  { %1868 = vrcp.f32 %v220_v56  ;;  %v232_v62 = vand.u32 2147483648, %v220_v56  ;;  %vm226_vm11 = vweird.f32 %v220_v56  ;;  %v230_v63 = vand.u32 2147483647, %v220_v56 }
 0x373   :  { %v233_v1 = vor.u32 1.1754944e-38, %v232_v62  ;;  %vm231_vm13 = vcmp.eq.f32.partialorder %v230_v63, 8.507059e+37 }
 0x377   :  { %v1869_v57 = vpop.eup %1868 }
 0x378   :  { %v222_v58 = vmul.f32 %v1869_v57, %v220_v56  ;;  %vm227_vm10 = vweird.f32 %v1869_v57 }
 0x379   :  { %vm228_vm12 = vmor %vm226_vm11, %vm227_vm10 }
 0x37a   :  { %v223_v59 = vsub.f32 1.0, %v222_v58 }
 0x37c   :  { %v224_v60 = vmul.f32 %v1869_v57, %v223_v59 }
 0x37e   :  { %v225_v61 = vadd.f32 %v1869_v57, %v224_v60 }
 0x380   :  { %v229_v0 = vsel %vm228_vm12, %v1869_v57, %v225_v61 }
 0x381   :  { %v234_v3 = vsel %vm231_vm13, %v233_v1, %v229_v0  ;;  %v43_v1 = vld [vmem:[%s2561_s3 + $0x30] sm:$0xff] }
 0x382   :  { %v237_v5 = vmul.f32 %v234_v3, %v182_v45  ;;  %410 = vmatpush.msra.mxu2 %v43_v1 }
 0x3c7   :  { %v240_v2 = vpop.permute.xlu2 %239 }
 0x3c8   :  { %v242_v4 = vmul.f32 %v240_v2, %v234_v3  ;;  %v42_v2 = vld [vmem:[%s2561_s3 + $0x28] sm:$0xff] }
 0x3c9   :  { %411 = vmatpush.msra.mxu2 %v42_v2 }
 0x3ca   :  { %244 = vrot.lane.b32.xlu0 %v242_v4, %s2047_s9  ;;  %v40_v4 = vld [vmem:[%s2561_s3 + $0x18] sm:$0xff] }
 0x43c   :  { %v245_v6 = vpop.permute.xlu0 %244 }
 0x43d   :  { %v247_v7 = vadd.f32 %v245_v6, %v237_v5 }
 0x43f   :  { %1870 = vtanh.f32 %v247_v7 }
 0x445   :  { %v1871_v8 = vpop.eup %1870 }
 0x446   :  { %250 = vrot.lane.b32.xlu1 %v1871_v8, %s2047_s9 }
 0x4b8   :  { %v251_v9 = vpop.permute.xlu1 %250 }
 0x4b9   :  { %v253_v10 = vmul.f32 %v251_v9, %v234_v3  ;;  %v41_v3 = vld [vmem:[%s2561_s3 + $0x20] sm:$0xff]  ;;  %v46_v9 = vld [vmem:[%s2561_s3 + $0x48] sm:$0xff] }
 0x4ba   :  { %412 = vmatpush.msra.mxu2 %v41_v3  ;;  %436 = vmatpush.msra.mxu3 %v46_v9 }
 0x4bb   :  { %255 = vrot.lane.b32.xlu2 %v253_v10, %s2048_s1  ;;  %v382_v36 = vrot.slane %v253_v10, 6  ;;  %v45_v10 = vld [vmem:[%s2561_s3 + $0x40] sm:$0xff] }
 0x4bc   :  { %413 = vmatpush.msra.mxu2 %v40_v4  ;;  %437 = vmatpush.msra.mxu3 %v45_v10 }
 0x4bd   :  { %v389_v40 = vsel %vm91_vm2, %v2131_v48, %v382_v36 }
 0x515   :  { %v256_v11 = vpop.permute.xlu2 %255 }
 0x516   :  { %1779 = vmatmul.msk.f32.vlgmr.msra.gmra.mxu1 %vm125_vm5, %v256_v11 }
 0x593   :  { %v278_v13 = vpop.f32.mrf.mxu1 }
 0x594   :  { %v279_v14 = vadd.f32 %v278_v13, %v257_v12  ;;  %v26_v12 = vld [vmem:[%s2560_s2 + $0x10] sm:$0xff]  ;;  %v25_v13 = vld [vmem:[%s2560_s2 + $0x8] sm:$0xff] }
 0x595   :  { %458 = vmatpush.msrb.mxu1 %v26_v12 }
 0x596   :  { %1872 = vtanh.f32 %v279_v14  ;;  %v1780_v16 = vmul.f32 -1.442695, %v279_v14  ;;  %v1849_v14 = vld [vmem:[%s2561_s3 + $0x38] ss:$0 sm:$0xff] }
 0x597   :  { %459 = vmatpush.msrb.mxu1 %v25_v13 }
 0x598   :  { %1874 = vpow2.f32 %v1780_v16 }
 0x59c   :  { %v1873_v15 = vpop.eup %1872 }
 0x59d   :  { %303 = vrot.lane.b32.xlu0 %v1873_v15, %s2047_s9 }
 0x59e   :  { %v1875_v17 = vpop.eup %1874 }
 0x59f   :  { %v284_v18 = vadd.f32 1.0, %v1875_v17  ;;  %v2190_v17 = vld [vmem:[%s2560_s2 + $0x30] sm:$0xff] }
 0x5a0   :  { %489 = vmatpush.msrb.mxu0 %v2190_v17  ;;  %557 = vmatpush.msrb.mxu2 %v2190_v17 }
 0x5a1   :  { %1876 = vrcp.f32 %v284_v18  ;;  %v296_v25 = vand.u32 2147483648, %v284_v18  ;;  %vm290_vm15 = vweird.f32 %v284_v18  ;;  %v294_v26 = vand.u32 2147483647, %v284_v18  ;;  %621 = vmatpush.msrb.mxu3 %v2190_v17  ;;  %685 = vmatpush.msra.mxu1 %v2190_v17 }
 0x5a3   :  { %v297_v28 = vor.u32 1.1754944e-38, %v296_v25  ;;  %vm295_vm6 = vcmp.eq.f32.partialorder %v294_v26, 8.507059e+37 }
 0x5a7   :  { %v1877_v19 = vpop.eup %1876 }
 0x5a8   :  { %v286_v20 = vmul.f32 %v1877_v19, %v284_v18  ;;  %vm291_vm14 = vweird.f32 %v1877_v19  ;;  %v2196_v18 = vld [vmem:[%s2560_s2 + $0x28] sm:$0xff] }
 0x5a9   :  { %vm292_vm4 = vmor %vm290_vm15, %vm291_vm14  ;;  %490 = vmatpush.msrb.mxu0 %v2196_v18  ;;  %558 = vmatpush.msrb.mxu2 %v2196_v18 }
 0x5aa   :  { %v287_v21 = vsub.f32 1.0, %v286_v20  ;;  %v2211_v20 = vld [vmem:[%s2560_s2 + $0x18] sm:$0xff]  ;;  %622 = vmatpush.msrb.mxu3 %v2196_v18  ;;  %686 = vmatpush.msra.mxu1 %v2196_v18 }
 0x5ac   :  { %v288_v22 = vmul.f32 %v1877_v19, %v287_v21  ;;  %v1850_v21 = vld [vmem:[%s2560_s2 + $0x38] ss:$0 sm:$0xff] }
 0x5ae   :  { %v289_v24 = vadd.f32 %v1877_v19, %v288_v22  ;;  %v1851_v22 = vld [vmem:[%s2560_s2 + $0x60] ss:$0 sm:$0xff] }
 0x5b0   :  { %v293_v27 = vsel %vm292_vm4, %v1877_v19, %v289_v24  ;;  %v2202_v19 = vld [vmem:[%s2560_s2 + $0x20] sm:$0xff] }
 0x5b1   :  { %v298_v30 = vsel %vm295_vm6, %v297_v28, %v293_v27  ;;  %491 = vmatpush.msrb.mxu0 %v2202_v19  ;;  %559 = vmatpush.msrb.mxu2 %v2202_v19  ;;  %v1852_v27 = vld [vmem:[%s2561_s3 + $0x50] ss:$0 sm:$0xff] }
 0x5b2   :  { %v301_v32 = vmul.f32 %v298_v30, %v247_v7  ;;  %623 = vmatpush.msrb.mxu3 %v2202_v19  ;;  %687 = vmatpush.msra.mxu1 %v2202_v19 }
 0x5b3   :  { %492 = vmatpush.msrb.mxu0 %v2211_v20  ;;  %560 = vmatpush.msrb.mxu2 %v2211_v20 }
 0x5b4   :  { %624 = vmatpush.msrb.mxu3 %v2211_v20  ;;  %688 = vmatpush.msra.mxu1 %v2211_v20 }
 0x60f   :  { %v304_v29 = vpop.permute.xlu0 %303 }
 0x610   :  { %v306_v31 = vmul.f32 %v304_v29, %v298_v30 }
 0x612   :  { %308 = vrot.lane.b32.xlu1 %v306_v31, %s2047_s9 }
 0x684   :  { %v309_v33 = vpop.permute.xlu1 %308 }
 0x685   :  { %v311_v34 = vadd.f32 %v309_v33, %v301_v32 }
 0x687   :  { %1878 = vtanh.f32 %v311_v34 }
 0x68d   :  { %v1879_v35 = vpop.eup %1878 }
 0x68e   :  { %314 = vrot.lane.b32.xlu2 %v1879_v35, %s2047_s9 }
 0x6e8   :  { %v315_v37 = vpop.permute.xlu2 %314 }
 0x6e9   :  { %v317_v38 = vmul.f32 %v315_v37, %v298_v30 }
 0x6eb   :  { %v384_v39 = vrot.slane %v317_v38, 4  ;;  %319 = vrot.lane.b32.xlu0 %v317_v38, %s2048_s1 }
 0x6ed   :  { %v390_v41 = vsel %vm93_vm1, %v389_v40, %v384_v39 }
 0x75d   :  { %v320_v42 = vpop.permute.xlu0 %319 }
 0x75e   :  { %1781 = vmatmul.msk.f32.vlgmr.msra.gmra.mxu0 %vm125_vm5, %v320_v42 }
 0x7db   :  { %v342_v44 = vpop.f32.mrf.mxu0 }
 0x7dc   :  { %v343_v45 = vadd.f32 %v342_v44, %v321_v43 }
 0x7de   :  { %1880 = vtanh.f32 %v343_v45  ;;  %v1782_v47 = vmul.f32 -1.442695, %v343_v45 }
 0x7e0   :  { %1882 = vpow2.f32 %v1782_v47 }
 0x7e4   :  { %v1881_v46 = vpop.eup %1880 }
 0x7e5   :  { %367 = vrot.lane.b32.xlu1 %v1881_v46, %s2047_s9 }
 0x7e6   :  { %v1883_v49 = vpop.eup %1882 }
 0x7e7   :  { %v348_v50 = vadd.f32 1.0, %v1883_v49 }
 0x7e9   :  { %1884 = vrcp.f32 %v348_v50  ;;  %v360_v55 = vand.u32 2147483648, %v348_v50  ;;  %vm354_vm8 = vweird.f32 %v348_v50  ;;  %v358_v23 = vand.u32 2147483647, %v348_v50 }
 0x7eb   :  { %v361_v57 = vor.u32 1.1754944e-38, %v360_v55  ;;  %vm359_vm10 = vcmp.eq.f32.partialorder %v358_v23, 8.507059e+37 }
 0x7ef   :  { %v1885_v51 = vpop.eup %1884 }
 0x7f0   :  { %v350_v48 = vmul.f32 %v1885_v51, %v348_v50  ;;  %vm355_vm7 = vweird.f32 %v1885_v51 }
 0x7f1   :  { %vm356_vm9 = vmor %vm354_vm8, %vm355_vm7 }
 0x7f2   :  { %v351_v52 = vsub.f32 1.0, %v350_v48 }
 0x7f4   :  { %v352_v53 = vmul.f32 %v1885_v51, %v351_v52 }
 0x7f6   :  { %v353_v54 = vadd.f32 %v1885_v51, %v352_v53 }
 0x7f8   :  { %v357_v56 = vsel %vm356_vm9, %v1885_v51, %v353_v54 }
 0x7f9   :  { %v362_v59 = vsel %vm359_vm10, %v361_v57, %v357_v56 }
 0x7fa   :  { %v365_v61 = vmul.f32 %v362_v59, %v311_v34 }
 0x857   :  { %v368_v58 = vpop.permute.xlu1 %367 }
 0x858   :  { %v370_v60 = vmul.f32 %v368_v58, %v362_v59 }
 0x85a   :  { %372 = vrot.lane.b32.xlu2 %v370_v60, %s2047_s9 }
 0x8b4   :  { %v373_v62 = vpop.permute.xlu2 %372 }
 0x8b5   :  { %v375_v63 = vadd.f32 %v373_v62, %v365_v61 }
 0x8b7   :  { %1886 = vtanh.f32 %v375_v63 }
 0x8bd   :  { %v1887_v0 = vpop.eup %1886 }
 0x8be   :  { %378 = vrot.lane.b32.xlu0 %v1887_v0, %s2047_s9 }
 0x930   :  { %v379_v5 = vpop.permute.xlu0 %378 }
 0x931   :  { %v381_v6 = vmul.f32 %v379_v5, %v362_v59 }
 0x933   :  { %v387_v7 = vrot.slane %v381_v6, 2 }
 0x935   :  { %v391_v8 = vsel %vm95_vm3, %v390_v41, %v387_v7 }
 0x936   :  { %394 = vrot.lane.b32.xlu1 %v391_v8, %s2048_s1 }
 0x9a8   :  { %v395_v11 = vpop.permute.xlu1 %394 }
 0x9a9   :  { %1783 = vmatmul.msk.f32.vlgmr.msra.gmra.mxu2 %vm125_vm5, %v395_v11 }
 0x9aa   :  { %792 = vmatpush.msra.mxu2 %v2190_v17 }
 0x9ac   :  { %793 = vmatpush.msra.mxu2 %v2196_v18 }
 0x9ae   :  { %794 = vmatpush.msra.mxu2 %v2202_v19 }
 0x9b0   :  { %795 = vmatpush.msra.mxu2 %v2211_v20 }
 0xa2c   :  { %v415_v15 = vpop.f32.mrf.mxu2 }
 0xa2d   :  { %v416_v16 = vadd.f32 %v1849_v14, %v415_v15 }
 0xa2f   :  { %1784 = vmatmul.msk.f32.vlgmr.msra.gmra.mxu3 %vm54_vm0, %v416_v16  ;;  %1785 = vmatmul.msk.f32.vlgmr.msrb.gmra.mxu1 %vm54_vm0, %v416_v16 }
 0xa30   :  { %860 = vmatpush.msra.mxu3 %v2190_v17  ;;  %924 = vmatpush.msrb.mxu1 %v2190_v17 }
 0xa32   :  { %861 = vmatpush.msra.mxu3 %v2196_v18  ;;  %925 = vmatpush.msrb.mxu1 %v2196_v18 }
 0xa34   :  { %862 = vmatpush.msra.mxu3 %v2202_v19  ;;  %926 = vmatpush.msrb.mxu1 %v2202_v19 }
 0xa36   :  { %863 = vmatpush.msra.mxu3 %v2211_v20  ;;  %927 = vmatpush.msrb.mxu1 %v2211_v20 }
 0xaac   :  { %v461_v24 = vpop.f32.mrf.mxu1 }
 0xaad   :  { %v462_v25 = vadd.f32 %v1850_v21, %v461_v24 }
 0xaaf   :  { %v2241_v26 = vadd.f32 %v1851_v22, %v462_v25  ;;  %v465_v40 = vrot.slane %v462_v25, 6  ;;  %v467_v41 = vrot.slane %v462_v25, 4  ;;  %v469_v44 = vrot.slane %v462_v25, 2 }
 0xab1   :  { %v2247_v28 = vrot.slane %v2241_v26, 2  ;;  %v2250_v29 = vrot.slane %v2241_v26, 6  ;;  %v2253_v30 = vrot.slane %v2241_v26, 4  ;;  %v471_v42 = vsel %vm91_vm2, %v462_v25, %v465_v40 }
 0xab2   :  { %v439_v31 = vpop.f32.mrf.mxu3  ;;  %v472_v43 = vsel %vm93_vm1, %v471_v42, %v467_v41 }
 0xab3   :  { %v440_v32 = vadd.f32 %v1852_v27, %v439_v31  ;;  %v1043_v33 = vsel %vm91_vm2, %v2253_v30, %v2247_v28  ;;  %v1337_v35 = vsel %vm91_vm2, %v2250_v29, %v2253_v30  ;;  %v2282_v45 = vsel %vm95_vm3, %v472_v43, %v469_v44 }
 0xab4   :  { %v1044_v34 = vsel %vm93_vm1, %v1043_v33, %v2241_v26  ;;  %v1338_v37 = vsel %vm93_vm1, %v1337_v35, %v2247_v28  ;;  %v541_v8 = vrot.slane %v2282_v45, 2 }
 0xab5   :  { %1888 = vtanh.f32 %v440_v32  ;;  %v2265_v36 = vsel %vm95_vm3, %v1044_v34, %v2250_v29  ;;  %v2271_v38 = vsel %vm95_vm3, %v1338_v37, %v2241_v26 }
 0xabb   :  { %v2273_v39 = vpop.eup %1888 }
 0xabc   :  { %517 = vrot.lane.b32.xlu0 %v2273_v39, %s2047_s9  ;;  %1786 = vmatmul.msk.f32.vlgmr.msrb.gmra.mxu0 %vm125_vm5, %v2273_v39  ;;  %v777_v7 = vrot.slane %v2273_v39, 2 }
 0xb2e   :  { %v518_v63 = vpop.permute.xlu0 %517 }
 0xb39   :  { %v494_v46 = vpop.f32.mrf.mxu0 }
 0xb3a   :  { %v495_v47 = vadd.f32 %v494_v46, %v2282_v45 }
 0xb3c   :  { %1890 = vtanh.f32 %v495_v47  ;;  %v1787_v50 = vmul.f32 -1.442695, %v495_v47  ;;  %v605_v47 = vrot.slane %v2282_v45, 4 }
 0xb3e   :  { %1892 = vpow2.f32 %v1787_v50 }
 0xb42   :  { %v1891_v49 = vpop.eup %1890 }
 0xb43   :  { %522 = vrot.lane.b32.xlu2 %v1891_v49, %s2047_s9 }
 0xb44   :  { %v1893_v51 = vpop.eup %1892 }
 0xb45   :  { %v500_v48 = vadd.f32 1.0, %v1893_v51 }
 0xb47   :  { %1894 = vrcp.f32 %v500_v48  ;;  %v512_v56 = vand.u32 2147483648, %v500_v48  ;;  %vm506_vm12 = vweird.f32 %v500_v48  ;;  %v510_v57 = vand.u32 2147483647, %v500_v48 }
 0xb49   :  { %v513_v59 = vor.u32 1.1754944e-38, %v512_v56  ;;  %vm511_vm14 = vcmp.eq.f32.partialorder %v510_v57, 8.507059e+37 }
 0xb4d   :  { %v1895_v52 = vpop.eup %1894 }
 0xb4e   :  { %v502_v53 = vmul.f32 %v1895_v52, %v500_v48  ;;  %vm507_vm11 = vweird.f32 %v1895_v52 }
 0xb4f   :  { %vm508_vm13 = vmor %vm506_vm12, %vm507_vm11 }
 0xb50   :  { %v503_v54 = vsub.f32 1.0, %v502_v53 }
 0xb52   :  { %v504_v55 = vmul.f32 %v1895_v52, %v503_v54 }
 0xb54   :  { %v505_v23 = vadd.f32 %v1895_v52, %v504_v55 }
 0xb56   :  { %v509_v58 = vsel %vm508_vm13, %v1895_v52, %v505_v23 }
 0xb57   :  { %v514_v61 = vsel %vm511_vm14, %v513_v59, %v509_v58 }
 0xb58   :  { %v520_v0 = vmul.f32 %v518_v63, %v514_v61 }
 0xb9d   :  { %v523_v60 = vpop.permute.xlu2 %522 }
 0xb9e   :  { %v525_v62 = vmul.f32 %v523_v60, %v514_v61 }
 0xba0   :  { %527 = vrot.lane.b32.xlu1 %v525_v62, %s2047_s9 }
 0xc12   :  { %v528_v1 = vpop.permute.xlu1 %527 }
 0xc13   :  { %v530_v2 = vadd.f32 %v528_v1, %v520_v0 }
 0xc15   :  { %1896 = vtanh.f32 %v530_v2 }
 0xc1b   :  { %v1897_v3 = vpop.eup %1896 }
 0xc1c   :  { %533 = vrot.lane.b32.xlu2 %v1897_v3, %s2047_s9 }
 0xc76   :  { %v534_v4 = vpop.permute.xlu2 %533 }
 0xc77   :  { %v2288_v5 = vmul.f32 %v534_v4, %v514_v61 }
 0xc79   :  { %538 = vrot.lane.b32.xlu0 %v2288_v5, %s2048_s1 }
 0xceb   :  { %v539_v6 = vpop.permute.xlu0 %538 }
 0xcec   :  { %1788 = vmatmul.msk.f32.vlgmr.msrb.gmra.mxu2 %vm125_vm5, %v539_v6 }
 0xcf4   :  { %1795 = vmatmul.msk.f32.vlgmr.msra.gmra.mxu2 %vm125_vm5, %v777_v7 }
 0xd6f   :  { %v562_v9 = vpop.f32.mrf.mxu2 }
 0xd70   :  { %v563_v10 = vadd.f32 %v562_v9, %v541_v8 }
 0xd72   :  { %1898 = vtanh.f32 %v563_v10  ;;  %v1789_v12 = vmul.f32 -1.442695, %v563_v10 }
 0xd74   :  { %1900 = vpow2.f32 %v1789_v12 }
 0xd78   :  { %v1899_v11 = vpop.eup %1898 }
 0xd79   :  { %587 = vrot.lane.b32.xlu1 %v1899_v11, %s2047_s9 }
 0xd7a   :  { %v1901_v13 = vpop.eup %1900 }
 0xd7b   :  { %v568_v14 = vadd.f32 1.0, %v1901_v13 }
 0xd7d   :  { %1902 = vrcp.f32 %v568_v14  ;;  %v580_v25 = vand.u32 2147483648, %v568_v14  ;;  %vm574_vm4 = vweird.f32 %v568_v14  ;;  %v578_v27 = vand.u32 2147483647, %v568_v14 }
 0xd7f   :  { %v581_v32 = vor.u32 1.1754944e-38, %v580_v25  ;;  %vm579_vm7 = vcmp.eq.f32.partialorder %v578_v27, 8.507059e+37 }
 0xd83   :  { %v1903_v15 = vpop.eup %1902 }
 0xd84   :  { %v570_v16 = vmul.f32 %v1903_v15, %v568_v14  ;;  %vm575_vm15 = vweird.f32 %v1903_v15  ;;  %v669_v14 = vrot.slane %v2282_v45, 6 }
 0xd85   :  { %vm576_vm6 = vmor %vm574_vm4, %vm575_vm15 }
 0xd86   :  { %v571_v21 = vsub.f32 1.0, %v570_v16 }
 0xd88   :  { %v572_v22 = vmul.f32 %v1903_v15, %v571_v21 }
 0xd8a   :  { %v573_v24 = vadd.f32 %v1903_v15, %v572_v22 }
 0xd8c   :  { %v577_v31 = vsel %vm576_vm6, %v1903_v15, %v573_v24 }
 0xd8d   :  { %v582_v34 = vsel %vm579_vm7, %v581_v32, %v577_v31 }
 0xd8e   :  { %v585_v37 = vmul.f32 %v582_v34, %v530_v2 }
 0xdeb   :  { %v588_v33 = vpop.permute.xlu1 %587 }
 0xdec   :  { %v590_v35 = vmul.f32 %v588_v33, %v582_v34 }
 0xdee   :  { %592 = vrot.lane.b32.xlu2 %v590_v35, %s2047_s9 }
 0xe48   :  { %v593_v40 = vpop.permute.xlu2 %592 }
 0xe49   :  { %v595_v41 = vadd.f32 %v593_v40, %v585_v37 }
 0xe4b   :  { %1904 = vtanh.f32 %v595_v41 }
 0xe51   :  { %v1905_v42 = vpop.eup %1904 }
 0xe52   :  { %598 = vrot.lane.b32.xlu0 %v1905_v42, %s2047_s9 }
 0xec4   :  { %v599_v43 = vpop.permute.xlu0 %598 }
 0xec5   :  { %v601_v44 = vmul.f32 %v599_v43, %v582_v34 }
 0xec7   :  { %603 = vrot.lane.b32.xlu1 %v601_v44, %s2048_s1  ;;  %v730_v6 = vrot.slane %v601_v44, 6 }
 0xec9   :  { %v737_v11 = vsel %vm91_vm2, %v2288_v5, %v730_v6 }
 0xf39   :  { %v604_v46 = vpop.permute.xlu1 %603 }
 0xf3a   :  { %1790 = vmatmul.msk.f32.vlgmr.msrb.gmra.mxu3 %vm125_vm5, %v604_v46 }
 0xf3b   :  { %1086 = vmatpush.msrb.mxu3 %v2190_v17 }
 0xf3d   :  { %1087 = vmatpush.msrb.mxu3 %v2196_v18 }
 0xf3f   :  { %1088 = vmatpush.msrb.mxu3 %v2202_v19 }
 0xf41   :  { %1089 = vmatpush.msrb.mxu3 %v2211_v20 }
 0xfbd   :  { %v626_v49 = vpop.f32.mrf.mxu3 }
 0xfbe   :  { %v627_v50 = vadd.f32 %v626_v49, %v605_v47  ;;  %v2332_v49 = vld [vmem:[%s2560_s2 + $0x58] sm:$0xff] }
 0xfbf   :  { %769 = vmatpush.msra.mxu0 %v2332_v49  ;;  %1063 = vmatpush.msrb.mxu2 %v2332_v49 }
 0xfc0   :  { %1906 = vtanh.f32 %v627_v50  ;;  %v1791_v48 = vmul.f32 -1.442695, %v627_v50  ;;  %v2337_v50 = vld [vmem:[%s2560_s2 + $0x50] sm:$0xff] }
 0xfc1   :  { %770 = vmatpush.msra.mxu0 %v2337_v50  ;;  %1064 = vmatpush.msrb.mxu2 %v2337_v50 }
 0xfc2   :  { %1908 = vpow2.f32 %v1791_v48 }
 0xfc6   :  { %v1907_v51 = vpop.eup %1906 }
 0xfc7   :  { %651 = vrot.lane.b32.xlu2 %v1907_v51, %s2047_s9  ;;  %v2344_v51 = vld [vmem:[%s2560_s2 + $0x48] sm:$0xff] }
 0xfc8   :  { %v1909_v52 = vpop.eup %1908  ;;  %771 = vmatpush.msra.mxu0 %v2344_v51  ;;  %1065 = vmatpush.msrb.mxu2 %v2344_v51 }
 0xfc9   :  { %v632_v53 = vadd.f32 1.0, %v1909_v52 }
 0xfcb   :  { %1910 = vrcp.f32 %v632_v53  ;;  %v644_v58 = vand.u32 2147483648, %v632_v53  ;;  %vm638_vm9 = vweird.f32 %v632_v53  ;;  %v642_v59 = vand.u32 2147483647, %v632_v53 }
 0xfcd   :  { %v645_v61 = vor.u32 1.1754944e-38, %v644_v58  ;;  %vm643_vm11 = vcmp.eq.f32.partialorder %v642_v59, 8.507059e+37 }
 0xfd1   :  { %v1911_v54 = vpop.eup %1910 }
 0xfd2   :  { %v634_v55 = vmul.f32 %v1911_v54, %v632_v53  ;;  %vm639_vm8 = vweird.f32 %v1911_v54 }
 0xfd3   :  { %vm640_vm10 = vmor %vm638_vm9, %vm639_vm8 }
 0xfd4   :  { %v635_v23 = vsub.f32 1.0, %v634_v55 }
 0xfd6   :  { %v636_v56 = vmul.f32 %v1911_v54, %v635_v23  ;;  %v749_v23 = vsel %vm91_vm2, %v2247_v28, %v2241_v26 }
 0xfd8   :  { %v637_v57 = vadd.f32 %v1911_v54, %v636_v56  ;;  %v750_v56 = vsel %vm93_vm1, %v749_v23, %v2250_v29 }
 0xfda   :  { %v641_v60 = vsel %vm640_vm10, %v1911_v54, %v637_v57  ;;  %v751_v57 = vsel %vm95_vm3, %v750_v56, %v2253_v30 }
 0xfdb   :  { %v646_v63 = vsel %vm643_vm11, %v645_v61, %v641_v60  ;;  %v797_v60 = vpop.f32.mrf.mxu2 }
 0xfdc   :  { %v649_v1 = vmul.f32 %v646_v63, %v595_v41 }
0x1021   :  { %v652_v62 = vpop.permute.xlu2 %651 }
0x1022   :  { %v654_v0 = vmul.f32 %v652_v62, %v646_v63 }
0x1024   :  { %656 = vrot.lane.b32.xlu0 %v654_v0, %s2047_s9 }
0x1096   :  { %v657_v2 = vpop.permute.xlu0 %656 }
0x1097   :  { %v659_v3 = vadd.f32 %v657_v2, %v649_v1 }
0x1099   :  { %1912 = vtanh.f32 %v659_v3 }
0x109f   :  { %v1913_v4 = vpop.eup %1912 }
0x10a0   :  { %662 = vrot.lane.b32.xlu1 %v1913_v4, %s2047_s9 }
0x1112   :  { %v663_v8 = vpop.permute.xlu1 %662 }
0x1113   :  { %v665_v9 = vmul.f32 %v663_v8, %v646_v63 }
0x1115   :  { %v732_v10 = vrot.slane %v665_v9, 4  ;;  %667 = vrot.lane.b32.xlu2 %v665_v9, %s2048_s1 }
0x1117   :  { %v2315_v12 = vsel %vm93_vm1, %v737_v11, %v732_v10 }
0x116f   :  { %v668_v13 = vpop.permute.xlu2 %667 }
0x1170   :  { %1792 = vmatmul.msk.f32.vlgmr.msra.gmra.mxu1 %vm125_vm5, %v668_v13 }
0x1171   :  { %1154 = vmatpush.msra.mxu1 %v2190_v17 }
0x1173   :  { %1155 = vmatpush.msra.mxu1 %v2196_v18 }
0x1175   :  { %1156 = vmatpush.msra.mxu1 %v2202_v19 }
0x1177   :  { %1157 = vmatpush.msra.mxu1 %v2211_v20 }
0x11ed   :  { %v690_v15 = vpop.f32.mrf.mxu1 }
0x11ee   :  { %v691_v16 = vadd.f32 %v690_v15, %v669_v14 }
0x11f0   :  { %1914 = vtanh.f32 %v691_v16  ;;  %v1793_v21 = vmul.f32 -1.442695, %v691_v16 }
0x11f2   :  { %1916 = vpow2.f32 %v1793_v21 }
0x11f6   :  { %v1915_v5 = vpop.eup %1914 }
0x11f7   :  { %715 = vrot.lane.b32.xlu0 %v1915_v5, %s2047_s9 }
0x11f8   :  { %v1917_v22 = vpop.eup %1916 }
0x11f9   :  { %v696_v24 = vadd.f32 1.0, %v1917_v22 }
0x11fb   :  { %1918 = vrcp.f32 %v696_v24  ;;  %v708_v34 = vand.u32 2147483648, %v696_v24  ;;  %vm702_vm13 = vweird.f32 %v696_v24  ;;  %v706_v45 = vand.u32 2147483647, %v696_v24 }
0x11fd   :  { %v709_v37 = vor.u32 1.1754944e-38, %v708_v34  ;;  %vm707_vm15 = vcmp.eq.f32.partialorder %v706_v45, 8.507059e+37 }
0x1201   :  { %v1919_v25 = vpop.eup %1918 }
0x1202   :  { %v698_v27 = vmul.f32 %v1919_v25, %v696_v24  ;;  %vm703_vm12 = vweird.f32 %v1919_v25  ;;  %v1071_v24 = vrot.slane %v2273_v39, 4 }
0x1203   :  { %vm704_vm14 = vmor %vm702_vm13, %vm703_vm12 }
0x1204   :  { %v699_v31 = vsub.f32 1.0, %v698_v27 }
0x1206   :  { %v700_v32 = vmul.f32 %v1919_v25, %v699_v31 }
0x1208   :  { %v701_v33 = vadd.f32 %v1919_v25, %v700_v32 }
0x120a   :  { %v705_v35 = vsel %vm704_vm14, %v1919_v25, %v701_v33 }
0x120b   :  { %v710_v41 = vsel %vm707_vm15, %v709_v37, %v705_v35 }
0x120c   :  { %v713_v43 = vmul.f32 %v710_v41, %v659_v3 }
0x1269   :  { %v716_v40 = vpop.permute.xlu0 %715 }
0x126a   :  { %v718_v42 = vmul.f32 %v716_v40, %v710_v41 }
0x126c   :  { %720 = vrot.lane.b32.xlu1 %v718_v42, %s2047_s9 }
0x12de   :  { %v721_v44 = vpop.permute.xlu1 %720 }
0x12df   :  { %v723_v46 = vadd.f32 %v721_v44, %v713_v43 }
0x12e1   :  { %1920 = vtanh.f32 %v723_v46 }
0x12e7   :  { %v1921_v47 = vpop.eup %1920 }
0x12e8   :  { %726 = vrot.lane.b32.xlu2 %v1921_v47, %s2047_s9 }
0x12f0   :  { %820 = vrot.lane.b32.xlu2 %v777_v7, %s2047_s9  ;;  %v2351_v7 = vld [vmem:[%s2560_s2 + $0x40] sm:$0xff] }
0x12f1   :  { %772 = vmatpush.msra.mxu0 %v2351_v7  ;;  %1066 = vmatpush.msrb.mxu2 %v2351_v7 }
0x12f3   :  { %988 = vmatpush.msrb.mxu0 %v2190_v17  ;;  %1282 = vmatpush.msra.mxu2 %v2190_v17 }
0x12f5   :  { %989 = vmatpush.msrb.mxu0 %v2196_v18  ;;  %1283 = vmatpush.msra.mxu2 %v2196_v18 }
0x12f7   :  { %990 = vmatpush.msrb.mxu0 %v2202_v19  ;;  %1284 = vmatpush.msra.mxu2 %v2202_v19 }
0x12f9   :  { %991 = vmatpush.msrb.mxu0 %v2211_v20  ;;  %1285 = vmatpush.msra.mxu2 %v2211_v20 }
0x1342   :  { %v727_v48 = vpop.permute.xlu2 %726 }
0x1343   :  { %v729_v52 = vmul.f32 %v727_v48, %v710_v41 }
0x1345   :  { %v735_v53 = vrot.slane %v729_v52, 2 }
0x1347   :  { %v739_v54 = vsel %vm95_vm3, %v2315_v12, %v735_v53 }
0x1348   :  { %753 = vrot.lane.b32.xlu0 %v739_v54, %s2048_s1 }
0x134a   :  { %v821_v12 = vpop.permute.xlu2 %820 }
0x13ba   :  { %v2368_v55 = vpop.permute.xlu0 %753 }
0x13bb   :  { %1794 = vmatmul.msk.f32.vlgmr.msra.gmra.mxu0 %vm125_vm5, %v2368_v55 }
0x13bc   :  { %1218 = vmatpush.msra.mxu0 %v2190_v17 }
0x13be   :  { %1219 = vmatpush.msra.mxu0 %v2196_v18 }
0x13c0   :  { %1220 = vmatpush.msra.mxu0 %v2202_v19 }
0x13c2   :  { %1221 = vmatpush.msra.mxu0 %v2211_v20 }
0x1438   :  { %v774_v58 = vpop.f32.mrf.mxu0 }
0x1439   :  { %v2383_v59 = vadd.f32 %v774_v58, %v751_v57 }
0x143b   :  { %v798_v61 = vadd.f32 %v797_v60, %v2383_v59  ;;  %v844_v25 = vrot.slane %v2383_v59, 2  ;;  %v908_v57 = vrot.slane %v2383_v59, 4 }
0x143d   :  { %1922 = vtanh.f32 %v798_v61  ;;  %v1796_v63 = vmul.f32 -1.442695, %v798_v61 }
0x143f   :  { %1924 = vpow2.f32 %v1796_v63 }
0x1443   :  { %v1923_v62 = vpop.eup %1922 }
0x1444   :  { %825 = vrot.lane.b32.xlu1 %v1923_v62, %s2047_s9 }
0x1445   :  { %v1925_v0 = vpop.eup %1924 }
0x1446   :  { %v803_v26 = vadd.f32 1.0, %v1925_v0 }
0x1448   :  { %1926 = vrcp.f32 %v803_v26  ;;  %v815_v3 = vand.u32 2147483648, %v803_v26  ;;  %vm809_vm6 = vweird.f32 %v803_v26  ;;  %v813_v4 = vand.u32 2147483647, %v803_v26 }
0x144a   :  { %v816_v8 = vor.u32 1.1754944e-38, %v815_v3  ;;  %vm814_vm8 = vcmp.eq.f32.partialorder %v813_v4, 8.507059e+37 }
0x144e   :  { %v1927_v28 = vpop.eup %1926 }
0x144f   :  { %v805_v29 = vmul.f32 %v1927_v28, %v803_v26  ;;  %vm810_vm4 = vweird.f32 %v1927_v28 }
0x1450   :  { %vm811_vm7 = vmor %vm809_vm6, %vm810_vm4 }
0x1451   :  { %v806_v1 = vsub.f32 1.0, %v805_v29 }
0x1453   :  { %v807_v2 = vmul.f32 %v1927_v28, %v806_v1 }
0x1455   :  { %v808_v30 = vadd.f32 %v1927_v28, %v807_v2 }
0x1457   :  { %v812_v6 = vsel %vm811_vm7, %v1927_v28, %v808_v30 }
0x1458   :  { %v817_v10 = vsel %vm814_vm8, %v816_v8, %v812_v6 }
0x1459   :  { %v823_v13 = vmul.f32 %v821_v12, %v817_v10 }
0x14b6   :  { %v826_v9 = vpop.permute.xlu1 %825 }
0x14b7   :  { %v828_v11 = vmul.f32 %v826_v9, %v817_v10 }
0x14b9   :  { %830 = vrot.lane.b32.xlu0 %v828_v11, %s2047_s9 }
0x152b   :  { %v831_v14 = vpop.permute.xlu0 %830 }
0x152c   :  { %v833_v15 = vadd.f32 %v831_v14, %v823_v13 }
0x152e   :  { %1928 = vtanh.f32 %v833_v15 }
0x1534   :  { %v1929_v16 = vpop.eup %1928 }
0x1535   :  { %836 = vrot.lane.b32.xlu1 %v1929_v16, %s2047_s9 }
0x15a7   :  { %v837_v5 = vpop.permute.xlu1 %836 }
0x15a8   :  { %v2389_v21 = vmul.f32 %v837_v5, %v817_v10 }
0x15aa   :  { %841 = vrot.lane.b32.xlu2 %v2389_v21, %s2048_s1 }
0x1604   :  { %v842_v22 = vpop.permute.xlu2 %841 }
0x1605   :  { %1797 = vmatmul.msk.f32.vlgmr.msra.gmra.mxu3 %vm125_vm5, %v842_v22 }
0x1606   :  { %1357 = vmatpush.msra.mxu3 %v2332_v49 }
0x1608   :  { %1358 = vmatpush.msra.mxu3 %v2337_v50 }
0x160a   :  { %1359 = vmatpush.msra.mxu3 %v2344_v51 }
0x160c   :  { %1360 = vmatpush.msra.mxu3 %v2351_v7 }
0x160d   :  { %1804 = vmatmul.msk.f32.vlgmr.msrb.gmra.mxu3 %vm125_vm5, %v1071_v24 }
0x160e   :  { %1576 = vmatpush.msrb.mxu3 %v2190_v17 }
0x1610   :  { %1577 = vmatpush.msrb.mxu3 %v2196_v18 }
0x1612   :  { %1578 = vmatpush.msrb.mxu3 %v2202_v19 }
0x1614   :  { %1579 = vmatpush.msrb.mxu3 %v2211_v20 }
0x1688   :  { %v865_v27 = vpop.f32.mrf.mxu3 }
0x1689   :  { %v866_v31 = vadd.f32 %v865_v27, %v844_v25 }
0x168b   :  { %1930 = vtanh.f32 %v866_v31  ;;  %v1798_v33 = vmul.f32 -1.442695, %v866_v31 }
0x168d   :  { %1932 = vpow2.f32 %v1798_v33 }
0x1691   :  { %v1931_v32 = vpop.eup %1930 }
0x1692   :  { %890 = vrot.lane.b32.xlu0 %v1931_v32, %s2047_s9  ;;  %v972_v32 = vrot.slane %v2383_v59, 6 }
0x1693   :  { %v1933_v34 = vpop.eup %1932 }
0x1694   :  { %v871_v45 = vadd.f32 1.0, %v1933_v34 }
0x1696   :  { %1934 = vrcp.f32 %v871_v45  ;;  %v883_v43 = vand.u32 2147483648, %v871_v45  ;;  %vm877_vm10 = vweird.f32 %v871_v45  ;;  %v881_v44 = vand.u32 2147483647, %v871_v45 }
0x1698   :  { %v884_v47 = vor.u32 1.1754944e-38, %v883_v43  ;;  %vm882_vm12 = vcmp.eq.f32.partialorder %v881_v44, 8.507059e+37 }
0x169c   :  { %v1935_v35 = vpop.eup %1934 }
0x169d   :  { %v873_v37 = vmul.f32 %v1935_v35, %v871_v45  ;;  %vm878_vm9 = vweird.f32 %v1935_v35 }
0x169e   :  { %vm879_vm11 = vmor %vm877_vm10, %vm878_vm9 }
0x169f   :  { %v874_v40 = vsub.f32 1.0, %v873_v37 }
0x16a1   :  { %v875_v41 = vmul.f32 %v1935_v35, %v874_v40 }
0x16a3   :  { %v876_v42 = vadd.f32 %v1935_v35, %v875_v41 }
0x16a5   :  { %v880_v46 = vsel %vm879_vm11, %v1935_v35, %v876_v42 }
0x16a6   :  { %v885_v50 = vsel %vm882_vm12, %v884_v47, %v880_v46 }
0x16a7   :  { %v888_v7 = vmul.f32 %v885_v50, %v833_v15 }
0x1704   :  { %v891_v49 = vpop.permute.xlu0 %890 }
0x1705   :  { %v893_v51 = vmul.f32 %v891_v49, %v885_v50 }
0x1707   :  { %895 = vrot.lane.b32.xlu1 %v893_v51, %s2047_s9 }
0x1779   :  { %v896_v48 = vpop.permute.xlu1 %895 }
0x177a   :  { %v898_v52 = vadd.f32 %v896_v48, %v888_v7 }
0x177c   :  { %1936 = vtanh.f32 %v898_v52 }
0x1782   :  { %v1937_v53 = vpop.eup %1936 }
0x1783   :  { %901 = vrot.lane.b32.xlu2 %v1937_v53, %s2047_s9 }
0x17dd   :  { %v902_v54 = vpop.permute.xlu2 %901 }
0x17de   :  { %v904_v23 = vmul.f32 %v902_v54, %v885_v50 }
0x17e0   :  { %906 = vrot.lane.b32.xlu0 %v904_v23, %s2048_s1  ;;  %v1033_v15 = vrot.slane %v904_v23, 6 }
0x17e2   :  { %v1040_v25 = vsel %vm91_vm2, %v2389_v21, %v1033_v15 }
0x1852   :  { %v907_v56 = vpop.permute.xlu0 %906 }
0x1853   :  { %1799 = vmatmul.msk.f32.vlgmr.msrb.gmra.mxu1 %vm125_vm5, %v907_v56 }
0x1854   :  { %1380 = vmatpush.msrb.mxu1 %v2190_v17 }
0x1856   :  { %1381 = vmatpush.msrb.mxu1 %v2196_v18 }
0x1858   :  { %1382 = vmatpush.msrb.mxu1 %v2202_v19 }
0x185a   :  { %1383 = vmatpush.msrb.mxu1 %v2211_v20 }
0x18d0   :  { %v929_v58 = vpop.f32.mrf.mxu1 }
0x18d1   :  { %v930_v60 = vadd.f32 %v929_v58, %v908_v57 }
0x18d3   :  { %1938 = vtanh.f32 %v930_v60  ;;  %v1800_v62 = vmul.f32 -1.442695, %v930_v60 }
0x18d5   :  { %1940 = vpow2.f32 %v1800_v62  ;;  %v1091_v62 = vpop.f32.mrf.mxu3 }
0x18d9   :  { %v1939_v61 = vpop.eup %1938 }
0x18da   :  { %954 = vrot.lane.b32.xlu1 %v1939_v61, %s2047_s9 }
0x18db   :  { %v1941_v63 = vpop.eup %1940 }
0x18dc   :  { %v935_v0 = vadd.f32 1.0, %v1941_v63 }
0x18de   :  { %1942 = vrcp.f32 %v935_v0  ;;  %v947_v30 = vand.u32 2147483648, %v935_v0  ;;  %vm941_vm14 = vweird.f32 %v935_v0  ;;  %v945_v3 = vand.u32 2147483647, %v935_v0 }
0x18e0   :  { %v948_v6 = vor.u32 1.1754944e-38, %v947_v30  ;;  %vm946_vm4 = vcmp.eq.f32.partialorder %v945_v3, 8.507059e+37 }
0x18e4   :  { %v1943_v26 = vpop.eup %1942 }
0x18e5   :  { %v937_v28 = vmul.f32 %v1943_v26, %v935_v0  ;;  %vm942_vm13 = vweird.f32 %v1943_v26 }
0x18e6   :  { %vm943_vm15 = vmor %vm941_vm14, %vm942_vm13 }
0x18e7   :  { %v938_v29 = vsub.f32 1.0, %v937_v28 }
0x18e9   :  { %v939_v1 = vmul.f32 %v1943_v26, %v938_v29 }
0x18eb   :  { %v940_v2 = vadd.f32 %v1943_v26, %v939_v1 }
0x18ed   :  { %v944_v4 = vsel %vm943_vm15, %v1943_v26, %v940_v2 }
0x18ee   :  { %v949_v9 = vsel %vm946_vm4, %v948_v6, %v944_v4 }
0x18ef   :  { %v952_v11 = vmul.f32 %v949_v9, %v898_v52 }
0x194c   :  { %v955_v8 = vpop.permute.xlu1 %954 }
0x194d   :  { %v957_v10 = vmul.f32 %v955_v8, %v949_v9 }
0x194f   :  { %959 = vrot.lane.b32.xlu2 %v957_v10, %s2047_s9 }
0x19a9   :  { %v960_v12 = vpop.permute.xlu2 %959 }
0x19aa   :  { %v962_v13 = vadd.f32 %v960_v12, %v952_v11 }
0x19ac   :  { %1944 = vtanh.f32 %v962_v13 }
0x19b2   :  { %v1945_v14 = vpop.eup %1944 }
0x19b3   :  { %965 = vrot.lane.b32.xlu0 %v1945_v14, %s2047_s9 }
0x1a25   :  { %v966_v16 = vpop.permute.xlu0 %965 }
0x1a26   :  { %v968_v5 = vmul.f32 %v966_v16, %v949_v9 }
0x1a28   :  { %v1035_v22 = vrot.slane %v968_v5, 4  ;;  %970 = vrot.lane.b32.xlu1 %v968_v5, %s2048_s1  ;;  %v1365_v5 = vrot.slane %v2273_v39, 6  ;;  %v48_v39 = vld [vmem:[%s2561_s3 + $0x58] sm:$0xff] }
0x1a2a   :  { %v1041_v27 = vsel %vm93_vm1, %v1040_v25, %v1035_v22 }
0x1a9a   :  { %v971_v31 = vpop.permute.xlu1 %970 }
0x1a9b   :  { %1801 = vmatmul.msk.f32.vlgmr.msrb.gmra.mxu0 %vm125_vm5, %v971_v31 }
0x1a9c   :  { %1448 = vmatpush.msrb.mxu0 %v2190_v17 }
0x1a9e   :  { %1449 = vmatpush.msrb.mxu0 %v2196_v18 }
0x1aa0   :  { %1450 = vmatpush.msrb.mxu0 %v2202_v19 }
0x1aa2   :  { %1451 = vmatpush.msrb.mxu0 %v2211_v20 }
0x1b18   :  { %v993_v33 = vpop.f32.mrf.mxu0 }
0x1b19   :  { %v994_v34 = vadd.f32 %v993_v33, %v972_v32 }
0x1b1b   :  { %1946 = vtanh.f32 %v994_v34  ;;  %v1802_v21 = vmul.f32 -1.442695, %v994_v34 }
0x1b1d   :  { %1948 = vpow2.f32 %v1802_v21 }
0x1b21   :  { %v1947_v45 = vpop.eup %1946 }
0x1b22   :  { %1018 = vrot.lane.b32.xlu2 %v1947_v45, %s2047_s9 }
0x1b23   :  { %v1949_v35 = vpop.eup %1948 }
0x1b24   :  { %v999_v37 = vadd.f32 1.0, %v1949_v35 }
0x1b26   :  { %1950 = vrcp.f32 %v999_v37  ;;  %v1011_v46 = vand.u32 2147483648, %v999_v37  ;;  %vm1005_vm7 = vweird.f32 %v999_v37  ;;  %v1009_v59 = vand.u32 2147483647, %v999_v37 }
0x1b28   :  { %v1012_v49 = vor.u32 1.1754944e-38, %v1011_v46  ;;  %vm1010_vm9 = vcmp.eq.f32.partialorder %v1009_v59, 8.507059e+37 }
0x1b2c   :  { %v1951_v40 = vpop.eup %1950 }
0x1b2d   :  { %v1001_v41 = vmul.f32 %v1951_v40, %v999_v37  ;;  %vm1006_vm6 = vweird.f32 %v1951_v40 }
0x1b2e   :  { %vm1007_vm8 = vmor %vm1005_vm7, %vm1006_vm6 }
0x1b2f   :  { %v1002_v42 = vsub.f32 1.0, %v1001_v41 }
0x1b31   :  { %v1003_v43 = vmul.f32 %v1951_v40, %v1002_v42 }
0x1b33   :  { %v1004_v44 = vadd.f32 %v1951_v40, %v1003_v43 }
0x1b35   :  { %v1008_v47 = vsel %vm1007_vm8, %v1951_v40, %v1004_v44 }
0x1b36   :  { %v1013_v51 = vsel %vm1010_vm9, %v1012_v49, %v1008_v47 }
0x1b37   :  { %v1016_v48 = vmul.f32 %v1013_v51, %v962_v13 }
0x1b7c   :  { %v1019_v50 = vpop.permute.xlu2 %1018 }
0x1b7d   :  { %v1021_v7 = vmul.f32 %v1019_v50, %v1013_v51 }
0x1b7f   :  { %1023 = vrot.lane.b32.xlu0 %v1021_v7, %s2047_s9 }
0x1bf1   :  { %v1024_v52 = vpop.permute.xlu0 %1023 }
0x1bf2   :  { %v1026_v53 = vadd.f32 %v1024_v52, %v1016_v48 }
0x1bf4   :  { %1952 = vtanh.f32 %v1026_v53 }
0x1bfa   :  { %v1953_v54 = vpop.eup %1952 }
0x1bfb   :  { %1029 = vrot.lane.b32.xlu1 %v1953_v54, %s2047_s9 }
0x1c03   :  { %1114 = vrot.lane.b32.xlu1 %v1071_v24, %s2047_s9 }
0x1c6d   :  { %v1030_v23 = vpop.permute.xlu1 %1029 }
0x1c6e   :  { %v1032_v56 = vmul.f32 %v1030_v23, %v1013_v51 }
0x1c70   :  { %v1038_v57 = vrot.slane %v1032_v56, 2 }
0x1c72   :  { %v1042_v58 = vsel %vm95_vm3, %v1041_v27, %v1038_v57 }
0x1c73   :  { %1047 = vrot.lane.b32.xlu2 %v1042_v58, %s2048_s1 }
0x1c75   :  { %v1115_v9 = vpop.permute.xlu1 %1114 }
0x1ccd   :  { %v2438_v60 = vpop.permute.xlu2 %1047 }
0x1cce   :  { %1803 = vmatmul.msk.f32.vlgmr.msrb.gmra.mxu2 %vm125_vm5, %v2438_v60 }
0x1ccf   :  { %1512 = vmatpush.msrb.mxu2 %v2190_v17 }
0x1cd1   :  { %1513 = vmatpush.msrb.mxu2 %v2196_v18 }
0x1cd3   :  { %1514 = vmatpush.msrb.mxu2 %v2202_v19 }
0x1cd5   :  { %1515 = vmatpush.msrb.mxu2 %v2211_v20 }
0x1d51   :  { %v1068_v24 = vpop.f32.mrf.mxu2 }
0x1d52   :  { %v2447_v61 = vadd.f32 %v1068_v24, %v2265_v36 }
0x1d54   :  { %v1092_v63 = vadd.f32 %v1091_v62, %v2447_v61  ;;  %v1138_v22 = vrot.slane %v2447_v61, 2  ;;  %v1202_v54 = vrot.slane %v2447_v61, 4 }
0x1d56   :  { %1954 = vtanh.f32 %v1092_v63  ;;  %v1805_v26 = vmul.f32 -1.442695, %v1092_v63 }
0x1d58   :  { %1956 = vpow2.f32 %v1805_v26 }
0x1d5c   :  { %v1955_v0 = vpop.eup %1954 }
0x1d5d   :  { %1119 = vrot.lane.b32.xlu0 %v1955_v0, %s2047_s9 }
0x1d5e   :  { %v1957_v17 = vpop.eup %1956 }
0x1d5f   :  { %v1097_v28 = vadd.f32 1.0, %v1957_v17 }
0x1d61   :  { %1958 = vrcp.f32 %v1097_v28  ;;  %v1109_v36 = vand.u32 2147483648, %v1097_v28  ;;  %vm1103_vm11 = vweird.f32 %v1097_v28  ;;  %v1107_v2 = vand.u32 2147483647, %v1097_v28 }
0x1d63   :  { %v1110_v3 = vor.u32 1.1754944e-38, %v1109_v36  ;;  %vm1108_vm13 = vcmp.eq.f32.partialorder %v1107_v2, 8.507059e+37 }
0x1d67   :  { %v1959_v18 = vpop.eup %1958 }
0x1d68   :  { %v1099_v19 = vmul.f32 %v1959_v18, %v1097_v28  ;;  %vm1104_vm10 = vweird.f32 %v1959_v18 }
0x1d69   :  { %vm1105_vm12 = vmor %vm1103_vm11, %vm1104_vm10 }
0x1d6a   :  { %v1100_v29 = vsub.f32 1.0, %v1099_v19 }
0x1d6c   :  { %v1101_v20 = vmul.f32 %v1959_v18, %v1100_v29 }
0x1d6e   :  { %v1102_v1 = vadd.f32 %v1959_v18, %v1101_v20 }
0x1d70   :  { %v1106_v30 = vsel %vm1105_vm12, %v1959_v18, %v1102_v1 }
0x1d71   :  { %v1111_v6 = vsel %vm1108_vm13, %v1110_v3, %v1106_v30 }
0x1d72   :  { %v1117_v10 = vmul.f32 %v1115_v9, %v1111_v6 }
0x1dcf   :  { %v1120_v4 = vpop.permute.xlu0 %1119 }
0x1dd0   :  { %v1122_v8 = vmul.f32 %v1120_v4, %v1111_v6 }
0x1dd2   :  { %1124 = vrot.lane.b32.xlu2 %v1122_v8, %s2047_s9 }
0x1e2c   :  { %v1125_v11 = vpop.permute.xlu2 %1124 }
0x1e2d   :  { %v1127_v12 = vadd.f32 %v1125_v11, %v1117_v10 }
0x1e2f   :  { %1960 = vtanh.f32 %v1127_v12 }
0x1e35   :  { %v1961_v13 = vpop.eup %1960 }
0x1e36   :  { %1130 = vrot.lane.b32.xlu0 %v1961_v13, %s2047_s9 }
0x1ea8   :  { %v1131_v14 = vpop.permute.xlu0 %1130 }
0x1ea9   :  { %v2453_v15 = vmul.f32 %v1131_v14, %v1111_v6 }
0x1eab   :  { %1135 = vrot.lane.b32.xlu1 %v2453_v15, %s2048_s1 }
0x1f1d   :  { %v1136_v16 = vpop.permute.xlu1 %1135 }
0x1f1e   :  { %1806 = vmatmul.msk.f32.vlgmr.msra.gmra.mxu1 %vm125_vm5, %v1136_v16  ;;  %v1266_v16 = vrot.slane %v2447_v61, 6 }
0x1f26   :  { %1813 = vmatmul.msk.f32.vlgmr.msrb.gmra.mxu1 %vm125_vm5, %v1365_v5 }
0x1f9b   :  { %v1159_v25 = vpop.f32.mrf.mxu1 }
0x1f9c   :  { %v1160_v27 = vadd.f32 %v1159_v25, %v1138_v22 }
0x1f9e   :  { %1962 = vtanh.f32 %v1160_v27  ;;  %v1807_v32 = vmul.f32 -1.442695, %v1160_v27 }
0x1fa0   :  { %1964 = vpow2.f32 %v1807_v32 }
0x1fa4   :  { %v1963_v31 = vpop.eup %1962 }
0x1fa5   :  { %1184 = vrot.lane.b32.xlu2 %v1963_v31, %s2047_s9 }
0x1fa6   :  { %v1965_v33 = vpop.eup %1964 }
0x1fa7   :  { %v1165_v34 = vadd.f32 1.0, %v1965_v33 }
0x1fa9   :  { %1966 = vrcp.f32 %v1165_v34  ;;  %v1177_v41 = vand.u32 2147483648, %v1165_v34  ;;  %vm1171_vm15 = vweird.f32 %v1165_v34  ;;  %v1175_v42 = vand.u32 2147483647, %v1165_v34 }
0x1fab   :  { %v1178_v44 = vor.u32 1.1754944e-38, %v1177_v41  ;;  %vm1176_vm6 = vcmp.eq.f32.partialorder %v1175_v42, 8.507059e+37 }
0x1faf   :  { %v1967_v45 = vpop.eup %1966 }
0x1fb0   :  { %v1167_v21 = vmul.f32 %v1967_v45, %v1165_v34  ;;  %vm1172_vm14 = vweird.f32 %v1967_v45 }
0x1fb1   :  { %vm1173_vm4 = vmor %vm1171_vm15, %vm1172_vm14 }
0x1fb2   :  { %v1168_v35 = vsub.f32 1.0, %v1167_v21 }
0x1fb4   :  { %v1169_v37 = vmul.f32 %v1967_v45, %v1168_v35 }
0x1fb6   :  { %v1170_v40 = vadd.f32 %v1967_v45, %v1169_v37 }
0x1fb8   :  { %v1174_v43 = vsel %vm1173_vm4, %v1967_v45, %v1170_v40 }
0x1fb9   :  { %v1179_v59 = vsel %vm1176_vm6, %v1178_v44, %v1174_v43 }
0x1fba   :  { %v1182_v49 = vmul.f32 %v1179_v59, %v1127_v12 }
0x1fff   :  { %v1185_v46 = vpop.permute.xlu2 %1184 }
0x2000   :  { %v1187_v47 = vmul.f32 %v1185_v46, %v1179_v59 }
0x2002   :  { %1189 = vrot.lane.b32.xlu0 %v1187_v47, %s2047_s9 }
0x2074   :  { %v1190_v50 = vpop.permute.xlu0 %1189 }
0x2075   :  { %v1192_v51 = vadd.f32 %v1190_v50, %v1182_v49  ;;  %v51_v50 = vld [vmem:[%s2561_s3 + $0x70] sm:$0xff] }
0x2076   :  { %1825 = vmatpush.msra.mxu1 %v51_v50 }
0x2077   :  { %1968 = vtanh.f32 %v1192_v51 }
0x207d   :  { %v1969_v7 = vpop.eup %1968 }
0x207e   :  { %1195 = vrot.lane.b32.xlu1 %v1969_v7, %s2047_s9  ;;  %v49_v7 = vld [vmem:[%s2561_s3 + $0x60] sm:$0xff] }
0x20f0   :  { %v1196_v48 = vpop.permute.xlu1 %1195 }
0x20f1   :  { %v1198_v52 = vmul.f32 %v1196_v48, %v1179_v59 }
0x20f3   :  { %1200 = vrot.lane.b32.xlu2 %v1198_v52, %s2048_s1  ;;  %v1327_v8 = vrot.slane %v1198_v52, 6 }
0x20f5   :  { %v1334_v12 = vsel %vm91_vm2, %v2453_v15, %v1327_v8 }
0x214d   :  { %v1201_v53 = vpop.permute.xlu2 %1200 }
0x214e   :  { %1808 = vmatmul.msk.f32.vlgmr.msra.gmra.mxu0 %vm125_vm5, %v1201_v53 }
0x214f   :  { %1649 = vmatpush.msra.mxu0 %v51_v50 }
0x21cb   :  { %v1223_v23 = vpop.f32.mrf.mxu0 }
0x21cc   :  { %v1224_v56 = vadd.f32 %v1223_v23, %v1202_v54 }
0x21ce   :  { %1970 = vtanh.f32 %v1224_v56  ;;  %v1809_v58 = vmul.f32 -1.442695, %v1224_v56 }
0x21d0   :  { %1972 = vpow2.f32 %v1809_v58 }
0x21d4   :  { %v1971_v57 = vpop.eup %1970 }
0x21d5   :  { %1248 = vrot.lane.b32.xlu0 %v1971_v57, %s2047_s9  ;;  %v1385_v57 = vpop.f32.mrf.mxu1 }
0x21d6   :  { %v1973_v24 = vpop.eup %1972 }
0x21d7   :  { %v1229_v62 = vadd.f32 1.0, %v1973_v24 }
0x21d9   :  { %1974 = vrcp.f32 %v1229_v62  ;;  %v1241_v18 = vand.u32 2147483648, %v1229_v62  ;;  %vm1235_vm8 = vweird.f32 %v1229_v62  ;;  %v1239_v19 = vand.u32 2147483647, %v1229_v62 }
0x21db   :  { %v1242_v20 = vor.u32 1.1754944e-38, %v1241_v18  ;;  %vm1240_vm10 = vcmp.eq.f32.partialorder %v1239_v19, 8.507059e+37 }
0x21df   :  { %v1975_v63 = vpop.eup %1974 }
0x21e0   :  { %v1231_v0 = vmul.f32 %v1975_v63, %v1229_v62  ;;  %vm1236_vm7 = vweird.f32 %v1975_v63 }
0x21e1   :  { %vm1237_vm9 = vmor %vm1235_vm8, %vm1236_vm7 }
0x21e2   :  { %v1232_v26 = vsub.f32 1.0, %v1231_v0 }
0x21e4   :  { %v1233_v17 = vmul.f32 %v1975_v63, %v1232_v26 }
0x21e6   :  { %v1234_v28 = vadd.f32 %v1975_v63, %v1233_v17 }
0x21e8   :  { %v1238_v29 = vsel %vm1237_vm9, %v1975_v63, %v1234_v28 }
0x21e9   :  { %v1243_v36 = vsel %vm1240_vm10, %v1242_v20, %v1238_v29 }
0x21ea   :  { %v1246_v30 = vmul.f32 %v1243_v36, %v1192_v51  ;;  %v50_v51 = vld [vmem:[%s2561_s3 + $0x68] sm:$0xff] }
0x21eb   :  { %1826 = vmatpush.msra.mxu1 %v50_v51  ;;  %1650 = vmatpush.msra.mxu0 %v50_v51 }
0x21ed   :  { %1827 = vmatpush.msra.mxu1 %v49_v7  ;;  %1651 = vmatpush.msra.mxu0 %v49_v7 }
0x21ef   :  { %1828 = vmatpush.msra.mxu1 %v48_v39  ;;  %1652 = vmatpush.msra.mxu0 %v48_v39 }
0x2247   :  { %v1249_v1 = vpop.permute.xlu0 %1248 }
0x2248   :  { %v1251_v2 = vmul.f32 %v1249_v1, %v1243_v36 }
0x224a   :  { %1253 = vrot.lane.b32.xlu1 %v1251_v2, %s2047_s9 }
0x22bc   :  { %v1254_v3 = vpop.permute.xlu1 %1253 }
0x22bd   :  { %v1256_v4 = vadd.f32 %v1254_v3, %v1246_v30 }
0x22bf   :  { %1976 = vtanh.f32 %v1256_v4 }
0x22c5   :  { %v1977_v6 = vpop.eup %1976 }
0x22c6   :  { %1259 = vrot.lane.b32.xlu2 %v1977_v6, %s2047_s9 }
0x2320   :  { %v1260_v9 = vpop.permute.xlu2 %1259 }
0x2321   :  { %v1262_v10 = vmul.f32 %v1260_v9, %v1243_v36 }
0x2323   :  { %v1329_v11 = vrot.slane %v1262_v10, 4  ;;  %1264 = vrot.lane.b32.xlu0 %v1262_v10, %s2048_s1 }
0x2325   :  { %v1335_v13 = vsel %vm93_vm1, %v1334_v12, %v1329_v11 }
0x2395   :  { %v1265_v14 = vpop.permute.xlu0 %1264 }
0x2396   :  { %1810 = vmatmul.msk.f32.vlgmr.msra.gmra.mxu2 %vm125_vm5, %v1265_v14 }
0x2419   :  { %v1287_v22 = vpop.f32.mrf.mxu2 }
0x241a   :  { %v1288_v25 = vadd.f32 %v1287_v22, %v1266_v16 }
0x241c   :  { %1978 = vtanh.f32 %v1288_v25  ;;  %v1811_v31 = vmul.f32 -1.442695, %v1288_v25 }
0x241e   :  { %1980 = vpow2.f32 %v1811_v31 }
0x2422   :  { %v1979_v27 = vpop.eup %1978 }
0x2423   :  { %1312 = vrot.lane.b32.xlu1 %v1979_v27, %s2047_s9 }
0x2424   :  { %v1981_v32 = vpop.eup %1980 }
0x2425   :  { %v1293_v33 = vadd.f32 1.0, %v1981_v32 }
0x2427   :  { %1982 = vrcp.f32 %v1293_v33  ;;  %v1305_v37 = vand.u32 2147483648, %v1293_v33  ;;  %vm1299_vm12 = vweird.f32 %v1293_v33  ;;  %v1303_v61 = vand.u32 2147483647, %v1293_v33 }
0x2429   :  { %v1306_v41 = vor.u32 1.1754944e-38, %v1305_v37  ;;  %vm1304_vm14 = vcmp.eq.f32.partialorder %v1303_v61, 8.507059e+37 }
0x242d   :  { %v1983_v34 = vpop.eup %1982 }
0x242e   :  { %v1295_v15 = vmul.f32 %v1983_v34, %v1293_v33  ;;  %vm1300_vm11 = vweird.f32 %v1983_v34 }
0x242f   :  { %vm1301_vm13 = vmor %vm1299_vm12, %vm1300_vm11 }
0x2430   :  { %v1296_v45 = vsub.f32 1.0, %v1295_v15 }
0x2432   :  { %v1297_v21 = vmul.f32 %v1983_v34, %v1296_v45 }
0x2434   :  { %v1298_v35 = vadd.f32 %v1983_v34, %v1297_v21 }
0x2436   :  { %v1302_v40 = vsel %vm1301_vm13, %v1983_v34, %v1298_v35 }
0x2437   :  { %v1307_v43 = vsel %vm1304_vm14, %v1306_v41, %v1302_v40 }
0x2438   :  { %v1310_v46 = vmul.f32 %v1307_v43, %v1256_v4 }
0x2495   :  { %v1313_v42 = vpop.permute.xlu1 %1312 }
0x2496   :  { %v1315_v44 = vmul.f32 %v1313_v42, %v1307_v43 }
0x2498   :  { %1317 = vrot.lane.b32.xlu2 %v1315_v44, %s2047_s9 }
0x24f2   :  { %v1318_v59 = vpop.permute.xlu2 %1317 }
0x24f3   :  { %v1320_v47 = vadd.f32 %v1318_v59, %v1310_v46 }
0x24f5   :  { %1984 = vtanh.f32 %v1320_v47 }
0x24fb   :  { %v1985_v49 = vpop.eup %1984 }
0x24fc   :  { %1323 = vrot.lane.b32.xlu0 %v1985_v49, %s2047_s9 }
0x2504   :  { %1408 = vrot.lane.b32.xlu0 %v1365_v5, %s2047_s9 }
0x256e   :  { %v1324_v5 = vpop.permute.xlu0 %1323 }
0x256f   :  { %v1326_v48 = vmul.f32 %v1324_v5, %v1307_v43 }
0x2571   :  { %v1332_v52 = vrot.slane %v1326_v48, 2 }
0x2573   :  { %v1336_v53 = vsel %vm95_vm3, %v1335_v13, %v1332_v52 }
0x2574   :  { %1341 = vrot.lane.b32.xlu1 %v1336_v53, %s2048_s1 }
0x2576   :  { %v1409_v3 = vpop.permute.xlu0 %1408 }
0x25e6   :  { %v1342_v54 = vpop.permute.xlu1 %1341 }
0x25e7   :  { %1812 = vmatmul.msk.f32.vlgmr.msra.gmra.mxu3 %vm125_vm5, %v1342_v54  ;;  %1823 = vmatmul.msk.f32.vlgmr.msra.gmra.mxu1 %vm125_vm5, %v1342_v54 }
0x266a   :  { %v1362_v23 = vpop.f32.mrf.mxu3 }
0x266b   :  { %v2501_v56 = vadd.f32 %v1362_v23, %v2271_v38 }
0x266d   :  { %v1386_v58 = vadd.f32 %v1385_v57, %v2501_v56  ;;  %v1432_v13 = vrot.slane %v2501_v56, 2  ;;  %v1496_v49 = vrot.slane %v2501_v56, 4 }
0x266f   :  { %1986 = vtanh.f32 %v1386_v58  ;;  %v1814_v62 = vmul.f32 -1.442695, %v1386_v58 }
0x2671   :  { %1988 = vpow2.f32 %v1814_v62 }
0x2675   :  { %v1987_v24 = vpop.eup %1986 }
0x2676   :  { %1413 = vrot.lane.b32.xlu2 %v1987_v24, %s2047_s9 }
0x2677   :  { %v1989_v63 = vpop.eup %1988 }
0x2678   :  { %v1391_v0 = vadd.f32 1.0, %v1989_v63 }
0x267a   :  { %1990 = vrcp.f32 %v1391_v0  ;;  %v1403_v38 = vand.u32 2147483648, %v1391_v0  ;;  %vm1397_vm4 = vweird.f32 %v1391_v0  ;;  %v1401_v29 = vand.u32 2147483647, %v1391_v0 }
0x267c   :  { %v1404_v1 = vor.u32 1.1754944e-38, %v1403_v38  ;;  %vm1402_vm7 = vcmp.eq.f32.partialorder %v1401_v29, 8.507059e+37 }
0x2680   :  { %v1991_v26 = vpop.eup %1990 }
0x2681   :  { %v1393_v17 = vmul.f32 %v1991_v26, %v1391_v0  ;;  %vm1398_vm15 = vweird.f32 %v1991_v26 }
0x2682   :  { %vm1399_vm6 = vmor %vm1397_vm4, %vm1398_vm15 }
0x2683   :  { %v1394_v28 = vsub.f32 1.0, %v1393_v17 }
0x2685   :  { %v1395_v18 = vmul.f32 %v1991_v26, %v1394_v28 }
0x2687   :  { %v1396_v19 = vadd.f32 %v1991_v26, %v1395_v18 }
0x2689   :  { %v1400_v20 = vsel %vm1399_vm6, %v1991_v26, %v1396_v19 }
0x268a   :  { %v1405_v2 = vsel %vm1402_vm7, %v1404_v1, %v1400_v20  ;;  %vm1730_vm7 = vcmask 195584  }
0x268b   :  { %v1411_v4 = vmul.f32 %v1409_v3, %v1405_v2 }
0x26d0   :  { %v1414_v36 = vpop.permute.xlu2 %1413 }
0x26d1   :  { %v1416_v30 = vmul.f32 %v1414_v36, %v1405_v2 }
0x26d3   :  { %1418 = vrot.lane.b32.xlu1 %v1416_v30, %s2047_s9 }
0x2745   :  { %v1419_v6 = vpop.permute.xlu1 %1418 }
0x2746   :  { %v1421_v8 = vadd.f32 %v1419_v6, %v1411_v4  ;;  %v1560_v4 = vrot.slane %v2501_v56, 6 }
0x2748   :  { %1992 = vtanh.f32 %v1421_v8 }
0x274e   :  { %v1993_v9 = vpop.eup %1992 }
0x274f   :  { %1424 = vrot.lane.b32.xlu2 %v1993_v9, %s2047_s9 }
0x27a9   :  { %v1425_v10 = vpop.permute.xlu2 %1424 }
0x27aa   :  { %v2507_v11 = vmul.f32 %v1425_v10, %v1405_v2 }
0x27ac   :  { %1429 = vrot.lane.b32.xlu0 %v2507_v11, %s2048_s1 }
0x281e   :  { %v1430_v12 = vpop.permute.xlu0 %1429 }
0x281f   :  { %1815 = vmatmul.msk.f32.vlgmr.msrb.gmra.mxu0 %vm125_vm5, %v1430_v12 }
0x2827   :  { %1821 = vmatmul.msk.f32.vlgmr.msra.gmra.mxu0 %vm125_vm5, %v2368_v55 }
0x282f   :  { %1822 = vmatmul.msk.f32.gmra.mxu0 %vm125_vm5, %v2438_v60 }
0x289c   :  { %v1453_v14 = vpop.f32.mrf.mxu0 }
0x289d   :  { %v1454_v16 = vadd.f32 %v1453_v14, %v1432_v13 }
0x289f   :  { %1994 = vtanh.f32 %v1454_v16  ;;  %v1816_v25 = vmul.f32 -1.442695, %v1454_v16 }
0x28a1   :  { %1996 = vpow2.f32 %v1816_v25 }
0x28a5   :  { %v1995_v22 = vpop.eup %1994 }
0x28a6   :  { %1478 = vrot.lane.b32.xlu1 %v1995_v22, %s2047_s9 }
0x28a7   :  { %v1997_v27 = vpop.eup %1996 }
0x28a8   :  { %v1459_v31 = vadd.f32 1.0, %v1997_v27 }
0x28aa   :  { %1998 = vrcp.f32 %v1459_v31  ;;  %v1471_v60 = vand.u32 2147483648, %v1459_v31  ;;  %vm1465_vm9 = vweird.f32 %v1459_v31  ;;  %v1469_v45 = vand.u32 2147483647, %v1459_v31 }
0x28ac   :  { %v1472_v35 = vor.u32 1.1754944e-38, %v1471_v60  ;;  %vm1470_vm11 = vcmp.eq.f32.partialorder %v1469_v45, 8.507059e+37  ;;  %v1853_v60 = vld [vmem:[%s2561_s3 + $0x78] ss:$0 sm:$0xff]  ;;  %s2052_s3 = smov 16  }
0x28b0   :  { %v1999_v32 = vpop.eup %1998 }
0x28b1   :  { %v1461_v33 = vmul.f32 %v1999_v32, %v1459_v31  ;;  %vm1466_vm8 = vweird.f32 %v1999_v32 }
0x28b2   :  { %vm1467_vm10 = vmor %vm1465_vm9, %vm1466_vm8  ;;  %vm1733_vm8 = vcmask 326656   ;;  %vm1735_vm9 = vcmask 392192  }
0x28b3   :  { %v1462_v34 = vsub.f32 1.0, %v1461_v33 }
0x28b5   :  { %v1463_v55 = vmul.f32 %v1999_v32, %v1462_v34 }
0x28b7   :  { %v1464_v15 = vadd.f32 %v1999_v32, %v1463_v55 }
0x28b9   :  { %v1468_v21 = vsel %vm1467_vm10, %v1999_v32, %v1464_v15  ;;  %v1654_v15 = vpop.f32.mrf.mxu0  ;;  %vm1737_vm10 = vcmask 457728  }
0x28ba   :  { %v1473_v61 = vsel %vm1470_vm11, %v1472_v35, %v1468_v21  ;;  %v2539_v45 = vadd.f32 %v1853_v60, %v1654_v15  ;;  %vm1739_vm11 = vcmask 523264  }
0x28bb   :  { %v1476_v41 = vmul.f32 %v1473_v61, %v1421_v8 }
0x28bc   :  { %v1667_v21 = vrot.slane %v2539_v45, 2 }
0x28c1   :  { %v1657_v35 = vpop.f32.mrf.mxu0 }
0x2918   :  { %v1479_v37 = vpop.permute.xlu1 %1478 }
0x2919   :  { %v1481_v40 = vmul.f32 %v1479_v37, %v1473_v61  ;;  %v1658_v37 = vadd.f32 %v1853_v60, %v1657_v35 }
0x291b   :  { %1483 = vrot.lane.b32.xlu2 %v1481_v40, %s2047_s9  ;;  %v1660_v40 = vpop.f32.mrf.mxu1 }
0x2975   :  { %v1484_v42 = vpop.permute.xlu2 %1483 }
0x2976   :  { %v1486_v43 = vadd.f32 %v1484_v42, %v1476_v41  ;;  %v1661_v41 = vadd.f32 %v1853_v60, %v1660_v40 }
0x2978   :  { %2000 = vtanh.f32 %v1486_v43  ;;  %v1703_v42 = vrot.slane %v1661_v41, 4 }
0x297e   :  { %v2001_v44 = vpop.eup %2000 }
0x297f   :  { %1489 = vrot.lane.b32.xlu0 %v2001_v44, %s2047_s9 }
0x29f1   :  { %v1490_v46 = vpop.permute.xlu0 %1489 }
0x29f2   :  { %v1492_v59 = vmul.f32 %v1490_v46, %v1473_v61  ;;  %v1691_v61 = vrot.slane %v1658_v37, 6 }
0x29f4   :  { %1494 = vrot.lane.b32.xlu1 %v1492_v59, %s2048_s1  ;;  %v1621_v29 = vrot.slane %v1492_v59, 6 }
0x29f6   :  { %v1628_v2 = vsel %vm91_vm2, %v2507_v11, %v1621_v29 }
0x2a66   :  { %v1495_v47 = vpop.permute.xlu1 %1494 }
0x2a67   :  { %1817 = vmatmul.msk.f32.vlgmr.msrb.gmra.mxu2 %vm125_vm5, %v1495_v47  ;;  %v1671_v47 = vrot.slane %v2539_v45, 4 }
0x2aea   :  { %v1517_v50 = vpop.f32.mrf.mxu2 }
0x2aeb   :  { %v1518_v51 = vadd.f32 %v1517_v50, %v1496_v49  ;;  %v1683_v49 = vrot.slane %v1658_v37, 2  ;;  %v1707_v50 = vrot.slane %v1661_v41, 6 }
0x2aed   :  { %2002 = vtanh.f32 %v1518_v51  ;;  %v1818_v39 = vmul.f32 -1.442695, %v1518_v51 }
0x2aef   :  { %2004 = vpow2.f32 %v1818_v39 }
0x2af3   :  { %v2003_v7 = vpop.eup %2002 }
0x2af4   :  { %1542 = vrot.lane.b32.xlu2 %v2003_v7, %s2047_s9 }
0x2af5   :  { %v2005_v5 = vpop.eup %2004 }
0x2af6   :  { %v1523_v48 = vadd.f32 1.0, %v2005_v5 }
0x2af8   :  { %2006 = vrcp.f32 %v1523_v48  ;;  %v1535_v58 = vand.u32 2147483648, %v1523_v48  ;;  %vm1529_vm13 = vweird.f32 %v1523_v48  ;;  %v1533_v24 = vand.u32 2147483647, %v1523_v48 }
0x2afa   :  { %v1536_v63 = vor.u32 1.1754944e-38, %v1535_v58  ;;  %vm1534_vm15 = vcmp.eq.f32.partialorder %v1533_v24, 8.507059e+37 }
0x2afe   :  { %v2007_v52 = vpop.eup %2006 }
0x2aff   :  { %v1525_v53 = vmul.f32 %v2007_v52, %v1523_v48  ;;  %vm1530_vm12 = vweird.f32 %v2007_v52  ;;  %v1675_v48 = vrot.slane %v2539_v45, 6 }
0x2b00   :  { %vm1531_vm14 = vmor %vm1529_vm13, %vm1530_vm12  ;;  %vm1741_vm12 = vcmask 588800   ;;  %vm1743_vm13 = vcmask 654336  }
0x2b01   :  { %v1526_v54 = vsub.f32 1.0, %v1525_v53  ;;  %v1699_v53 = vrot.slane %v1661_v41, 2 }
0x2b03   :  { %v1527_v23 = vmul.f32 %v2007_v52, %v1526_v54 }
0x2b05   :  { %v1528_v57 = vadd.f32 %v2007_v52, %v1527_v23 }
0x2b07   :  { %v1532_v62 = vsel %vm1531_vm14, %v2007_v52, %v1528_v57  ;;  %v1687_v52 = vrot.slane %v1658_v37, 4  ;;  %vm1747_vm14 = vcmask 785408  }
0x2b08   :  { %v1537_v26 = vsel %vm1534_vm15, %v1536_v63, %v1532_v62  ;;  %vm1751_vm15 = vcmask 916480  }
0x2b09   :  { %v1540_v28 = vmul.f32 %v1537_v26, %v1486_v43 }
0x2b4e   :  { %v1543_v0 = vpop.permute.xlu2 %1542 }
0x2b4f   :  { %v1545_v17 = vmul.f32 %v1543_v0, %v1537_v26 }
0x2b51   :  { %1547 = vrot.lane.b32.xlu0 %v1545_v17, %s2047_s9 }
0x2bc3   :  { %v1548_v18 = vpop.permute.xlu0 %1547 }
0x2bc4   :  { %v1550_v19 = vadd.f32 %v1548_v18, %v1540_v28 }
0x2bc6   :  { %2008 = vtanh.f32 %v1550_v19 }
0x2bcc   :  { %v2009_v38 = vpop.eup %2008 }
0x2bcd   :  { %1553 = vrot.lane.b32.xlu1 %v2009_v38, %s2047_s9 }
0x2c3f   :  { %v1554_v20 = vpop.permute.xlu1 %1553 }
0x2c40   :  { %v1556_v1 = vmul.f32 %v1554_v20, %v1537_v26 }
0x2c42   :  { %v1623_v36 = vrot.slane %v1556_v1, 4  ;;  %1558 = vrot.lane.b32.xlu2 %v1556_v1, %s2048_s1 }
0x2c44   :  { %v2530_v30 = vsel %vm93_vm1, %v1628_v2, %v1623_v36 }
0x2c9c   :  { %v1559_v3 = vpop.permute.xlu2 %1558 }
0x2c9d   :  { %1819 = vmatmul.msk.f32.vlgmr.msrb.gmra.mxu3 %vm125_vm5, %v1559_v3 }
0x2d20   :  { %v1581_v6 = vpop.f32.mrf.mxu3 }
0x2d21   :  { %v1582_v8 = vadd.f32 %v1581_v6, %v1560_v4 }
0x2d23   :  { %2010 = vtanh.f32 %v1582_v8  ;;  %v1820_v10 = vmul.f32 -1.442695, %v1582_v8 }
0x2d25   :  { %2012 = vpow2.f32 %v1820_v10 }
0x2d29   :  { %v2011_v9 = vpop.eup %2010 }
0x2d2a   :  { %1606 = vrot.lane.b32.xlu0 %v2011_v9, %s2047_s9 }
0x2d2b   :  { %v2013_v12 = vpop.eup %2012 }
0x2d2c   :  { %v1587_v13 = vadd.f32 1.0, %v2013_v12 }
0x2d2e   :  { %2014 = vrcp.f32 %v1587_v13  ;;  %v1599_v27 = vand.u32 2147483648, %v1587_v13  ;;  %vm1593_vm2 = vweird.f32 %v1587_v13  ;;  %v1597_v56 = vand.u32 2147483647, %v1587_v13 }
0x2d30   :  { %v1600_v32 = vor.u32 1.1754944e-38, %v1599_v27  ;;  %vm1598_vm6 = vcmp.eq.f32.partialorder %v1597_v56, 8.507059e+37 }
0x2d34   :  { %v2015_v11 = vpop.eup %2014 }
0x2d35   :  { %v1589_v14 = vmul.f32 %v2015_v11, %v1587_v13  ;;  %vm1594_vm1 = vweird.f32 %v2015_v11 }
0x2d36   :  { %vm1595_vm4 = vmor %vm1593_vm2, %vm1594_vm1  ;;  %vm1753_vm1 = vcmask 982016  }
0x2d37   :  { %v1590_v16 = vsub.f32 1.0, %v1589_v14 }
0x2d39   :  { %v1591_v22 = vmul.f32 %v2015_v11, %v1590_v16 }
0x2d3b   :  { %v1592_v25 = vadd.f32 %v2015_v11, %v1591_v22 }
0x2d3d   :  { %v1596_v31 = vsel %vm1595_vm4, %v2015_v11, %v1592_v25 }
0x2d3e   :  { %v1601_v34 = vsel %vm1598_vm6, %v1600_v32, %v1596_v31 }
0x2d3f   :  { %v1604_v43 = vmul.f32 %v1601_v34, %v1550_v19 }
0x2d9c   :  { %v1607_v33 = vpop.permute.xlu0 %1606 }
0x2d9d   :  { %v1609_v55 = vmul.f32 %v1607_v33, %v1601_v34 }
0x2d9f   :  { %1611 = vrot.lane.b32.xlu1 %v1609_v55, %s2047_s9 }
0x2da7   :  { %1668 = vrot.lane.b32.xlu1 %v1667_v21, %s2049_s11 }
0x2daf   :  { %1680 = vrot.lane.b32.xlu1 %v1658_v37, %s2047_s9 }
0x2db7   :  { %1692 = vrot.lane.b32.xlu1 %v1691_v61, %s2050_s12 }
0x2dbf   :  { %1704 = vrot.lane.b32.xlu1 %v1703_v42, %s2051_s13 }
0x2e11   :  { %v1612_v44 = vpop.permute.xlu1 %1611 }
0x2e12   :  { %v1614_v46 = vadd.f32 %v1612_v44, %v1604_v43 }
0x2e14   :  { %2016 = vtanh.f32 %v1614_v46 }
0x2e19   :  { %v1669_v63 = vpop.permute.xlu1 %1668 }
0x2e1a   :  { %v2017_v59 = vpop.eup %2016 }
0x2e1b   :  { %1617 = vrot.lane.b32.xlu2 %v2017_v59, %s2047_s9  ;;  %s2055_s9 = smov 24  }
0x2e21   :  { %v1681_v17 = vpop.permute.xlu1 %1680 }
0x2e23   :  { %1672 = vrot.lane.b32.xlu2 %v1671_v47, %s2052_s3 }
0x2e29   :  { %v1693_v20 = vpop.permute.xlu1 %1692 }
0x2e2b   :  { %1684 = vrot.lane.b32.xlu2 %v1683_v49, %s2053_s14 }
0x2e31   :  { %v1705_v6 = vpop.permute.xlu1 %1704 }
0x2e33   :  { %1696 = vrot.lane.b32.xlu2 %v1661_v41, %s2048_s1 }
0x2e3b   :  { %1708 = vrot.lane.b32.xlu2 %v1707_v50, %s2054_s15 }
0x2e75   :  { %v1618_v51 = vpop.permute.xlu2 %1617 }
0x2e76   :  { %v1620_v7 = vmul.f32 %v1618_v51, %v1601_v34 }
0x2e78   :  { %v1626_v39 = vrot.slane %v1620_v7, 2 }
0x2e7a   :  { %v1630_v5 = vsel %vm95_vm3, %v2530_v30, %v1626_v39  ;;  %vm1727_vm3 = vcmask 64512  }
0x2e7b   :  { %1633 = vrot.lane.b32.xlu0 %v1630_v5, %s2048_s1  ;;  %s2059_s1 = smov 112   ;;  %v1728_v28 = vsel %vm1727_vm3, %v2539_v45, %v1669_v63 }
0x2e7d   :  { %v1673_v0 = vpop.permute.xlu2 %1672 }
0x2e7e   :  { %v1729_v19 = vsel %vm54_vm0, %v1728_v28, %v1673_v0  ;;  %vm1745_vm0 = vcmask 719872  }
0x2e83   :  { %1676 = vrot.lane.b32.xlu0 %v1675_v48, %s2055_s9 }
0x2e85   :  { %v1685_v18 = vpop.permute.xlu2 %1684 }
0x2e8b   :  { %1688 = vrot.lane.b32.xlu0 %v1687_v52, %s2056_s16 }
0x2e8d   :  { %v1697_v30 = vpop.permute.xlu2 %1696 }
0x2e93   :  { %1700 = vrot.lane.b32.xlu0 %v1699_v53, %s2057_s17 }
0x2e95   :  { %v1709_v12 = vpop.permute.xlu2 %1708 }
0x2eed   :  { %v1634_v54 = vpop.permute.xlu0 %1633 }
0x2eee   :  { %1824 = vmatmul.msk.f32.gmra.mxu1 %vm125_vm5, %v1634_v54 }
0x2ef5   :  { %v1677_v26 = vpop.permute.xlu0 %1676 }
0x2ef6   :  { %v1731_v38 = vsel %vm1730_vm7, %v1729_v19, %v1677_v26 }
0x2ef7   :  { %v1732_v1 = vsel %vm125_vm5, %v1731_v38, %v1681_v17  ;;  %vm1749_vm5 = vcmask 850944  }
0x2ef8   :  { %v1734_v36 = vsel %vm1733_vm8, %v1732_v1, %v1685_v18 }
0x2efd   :  { %v1689_v29 = vpop.permute.xlu0 %1688 }
0x2efe   :  { %v1736_v2 = vsel %vm1735_vm9, %v1734_v36, %v1689_v29 }
0x2eff   :  { %v1738_v3 = vsel %vm1737_vm10, %v1736_v2, %v1693_v20 }
0x2f00   :  { %v1740_v8 = vsel %vm1739_vm11, %v1738_v3, %v1697_v30 }
0x2f05   :  { %v1701_v4 = vpop.permute.xlu0 %1700 }
0x2f06   :  { %v1742_v9 = vsel %vm1741_vm12, %v1740_v8, %v1701_v4 }
0x2f07   :  { %v1744_v10 = vsel %vm1743_vm13, %v1742_v9, %v1705_v6 }
0x2f08   :  { %v1746_v11 = vsel %vm1745_vm0, %v1744_v10, %v1709_v12 }
0x2f6b   :  { %v1663_v23 = vpop.f32.mrf.mxu1 }
0x2f6c   :  { %v1664_v57 = vadd.f32 %v1853_v60, %v1663_v23 }
0x2f6e   :  { %1712 = vrot.lane.b32.xlu0 %v1664_v57, %s2058_s18  ;;  %v1719_v58 = vrot.slane %v1664_v57, 4  ;;  %v1715_v24 = vrot.slane %v1664_v57, 2  ;;  %v1723_v62 = vrot.slane %v1664_v57, 6 }
0x2f70   :  { %1720 = vrot.lane.b32.xlu2 %v1719_v58, %s2059_s1  ;;  %1716 = vrot.lane.b32.xlu1 %v1715_v24, %s2060_s19 }
0x2f76   :  { %1724 = vrot.lane.b32.xlu0 %v1723_v62, %s2046_s23  ;;  %s2061_s23 = smov [#allocation2]  }
0x2f77   :  { %s1761_s20 = sshll.u32 %s2061_s23, 4  ;;  %s1762_s20 = int_to_ptr.vmem [resolvable:$true] %s1761_s20 }
0x2fca   :  { %v1721_v25 = vpop.permute.xlu2 %1720 }
0x2fe0   :  { %v1713_v13 = vpop.permute.xlu0 %1712 }
0x2fe1   :  { %v1748_v14 = vsel %vm1747_vm14, %v1746_v11, %v1713_v13 }
0x2fe2   :  { %v1717_v16 = vpop.permute.xlu1 %1716 }
0x2fe3   :  { %v1750_v22 = vsel %vm1749_vm5, %v1748_v14, %v1717_v16 }
0x2fe4   :  { %v1752_v27 = vsel %vm1751_vm15, %v1750_v22, %v1721_v25 }
0x2fe8   :  { %v1725_v56 = vpop.permute.xlu0 %1724 }
0x2fe9   :  { %v1754_v31 = vsel %vm1753_vm1, %v1752_v27, %v1725_v56 }
0x2fea   :  { %1755 = vst [vmem:[#allocation2] sm:$0x3] %v1754_v31 }
0x2feb   :  { %1766 = dma.vmem_to_hbm [thread:$0]  %s1762_s20, 32, %s1764_s24, [#allocation3]  }
0x2fec   :  { %2042 = dma.done.wait [#allocation3], 32  }
0x2fed   :  { %2043 = vsyncadd [#allocation3], 4294967264 }
0x2fee   :  { %1771 = vsyncpa [#allocation3], 1 }

</bundles_post_ra>
